<compile_context>
chip_gen: v7x
topology: tpu7x:2x2x1
jax: 0.10.0
libtpu: 0.0.40
codegen_flags: <defaults>
</compile_context>

<pallas_src>
import math
import numpy as np
import jax
import jax.numpy as jnp
from jax.experimental import pallas as pl
from jax.experimental.pallas import tpu as pltpu


_LANES = 128
_TK_CAP_ROWS = 2304   # 72 * 32 rows; (TK,128) f32 slab = 1.18 MB -> all buffers << 32 MiB scoped VMEM on v5e/v6e/v7x


# ---------------------------------------------------------------------------
# Numpy reference (identical math to the PyTorch module) — also used to build
# the exact (f64) base-anchor pattern consumed by the kernel.
# ---------------------------------------------------------------------------
def generate_anchors(base_size=16, ratios=None, scales=None):
    if ratios is None:
        ratios = np.array([0.5, 1, 2])
    if scales is None:
        scales = np.array([2 ** 0, 2 ** (1.0 / 3.0), 2 ** (2.0 / 3.0)])
    num_anchors = len(ratios) * len(scales)
    anchors = np.zeros((num_anchors, 4))
    anchors[:, 2:] = base_size * np.tile(scales, (2, len(ratios))).T
    areas = anchors[:, 2] * anchors[:, 3]
    anchors[:, 2] = np.sqrt(areas / np.repeat(ratios, len(scales)))
    anchors[:, 3] = anchors[:, 2] * np.repeat(ratios, len(scales))
    anchors[:, 0::2] -= np.tile(anchors[:, 2] * 0.5, (2, 1)).T
    anchors[:, 1::2] -= np.tile(anchors[:, 3] * 0.5, (2, 1)).T
    return anchors


def shift_ref(shape, stride, anchors):
    shift_x = (np.arange(0, shape[1]) + 0.5) * stride
    shift_y = (np.arange(0, shape[0]) + 0.5) * stride
    shift_x, shift_y = np.meshgrid(shift_x, shift_y)
    shifts = np.vstack(
        (shift_x.ravel(), shift_y.ravel(), shift_x.ravel(), shift_y.ravel())
    ).transpose()
    A = anchors.shape[0]
    K = shifts.shape[0]
    all_anchors = anchors.reshape((1, A, 4)) + shifts.reshape((1, K, 4)).transpose((1, 0, 2))
    return all_anchors.reshape((K * A, 4))


# ---------------------------------------------------------------------------
# Kernel builder: level-pure tiles, trace-time specialized per level.
# ---------------------------------------------------------------------------
def _build_kernel(level_tiles, k_per_tile):
    """level_tiles: list of dicts {ts, nt, fw, stride} (Python constants)."""

    def kernel(kin_ref, isy_ref, base_ref, out_ref):
        tile = pl.program_id(0)
        for lp in level_tiles:
            ts, nt = lp["ts"], lp["nt"]
            fw, stride = lp["fw"], lp["stride"]

            @pl.when((tile >= ts) & (tile < ts + nt))
            def _(ts=ts, nt=nt, fw=fw, stride=stride):
                # cell index within this level's feature map
                k = kin_ref[...]
                if nt > 1:
                    k = k + (tile - ts) * k_per_tile   # scalar offset per tile

                if fw & (fw - 1) == 0:                 # power of two -> shift/mask
                    sh = fw.bit_length() - 1
                    row = k >> sh
                    col = k & (fw - 1)
                else:                                  # constant-divisor div
                    row = k // fw
                    col = k - row * fw

                sx = (col.astype(jnp.float32) + 0.5) * stride
                sy = (row.astype(jnp.float32) + 0.5) * stride
                shift = jnp.where(isy_ref[...] > 0.5, sy, sx)
                out_ref[...] = base_ref[0] + shift

    return kernel


def _anchors_for_shape(H, W, pyramid_levels, strides, sizes, ratios, scales):
    ratios = np.asarray(ratios, dtype=np.float64)
    scales = np.asarray(scales, dtype=np.float64)
    A = len(ratios) * len(scales)
    P = A * 4                                        # flattened (anchor, coord) period

    # TK granularity: TK*128 must be a multiple of the pattern period P and TK
    # a sublane multiple (8).  Default P=36 -> unit = 72.
    unit = P // math.gcd(P, _LANES)
    unit = unit * 8 // math.gcd(unit, 8)             # lcm(unit, 8)

    levels = []
    for idx, p in enumerate(pyramid_levels):
        fh = -(-H // (2 ** p))
        fw = -(-W // (2 ** p))
        elems = fh * fw * P
        levels.append(dict(fw=fw, elems=elems,
                           rows=-(-elems // _LANES),
                           stride=float(strides[idx]),
                           size=float(sizes[idx])))

    max_rows = max(l["rows"] for l in levels)
    cap = max(unit, (_TK_CAP_ROWS // unit) * unit)
    TK = min(cap, -(-max_rows // unit) * unit)

    # per-level tile ranges: each level padded to whole tiles -> level-pure tiles
    level_tiles = []
    num_tiles = 0
    for l in levels:
        nt = -(-l["rows"] // TK)
        level_tiles.append(dict(ts=num_tiles, nt=nt, fw=l["fw"], stride=l["stride"]))
        num_tiles += nt

    total_padded = num_tiles * TK * _LANES
    assert total_padded < 2 ** 31, "flat element index would overflow int32"

    # ---- trace-time constant slabs (valid for every tile of a level because
    #      TK*128 is a multiple of the P-element pattern period) ----
    flat = np.arange(TK * _LANES, dtype=np.int64)
    mod = flat % P
    a_idx = mod // 4
    c_idx = mod % 4
    kin = (flat // P).astype(np.int32).reshape(TK, _LANES)          # in-tile cell index
    isy = (c_idx % 2).astype(np.float32).reshape(TK, _LANES)        # coord is y?
    base_all = np.stack(
        [generate_anchors(base_size=l["size"], ratios=ratios, scales=scales)[a_idx, c_idx]
         .astype(np.float32).reshape(TK, _LANES) for l in levels],
        axis=0)                                                      # (L, TK, 128)

    k_per_tile = (TK * _LANES) // P
    kernel = _build_kernel(level_tiles, k_per_tile)

    ts_after_first = [lt["ts"] for lt in level_tiles[1:]]

    def base_index_map(i):
        lvl = jnp.int32(0)
        for ts in ts_after_first:
            lvl = lvl + (i >= ts).astype(jnp.int32)
        return (lvl, 0, 0)

    out_flat = pl.pallas_call(
        kernel,
        out_shape=jax.ShapeDtypeStruct((num_tiles * TK, _LANES), jnp.float32),
        grid=(num_tiles,),
        in_specs=[
            pl.BlockSpec((TK, _LANES), lambda i: (0, 0)),            # cell-index slab (shared)
            pl.BlockSpec((TK, _LANES), lambda i: (0, 0)),            # is_y mask (shared)
            pl.BlockSpec((1, TK, _LANES), base_index_map),           # per-level base pattern
        ],
        out_specs=pl.BlockSpec((TK, _LANES), lambda i: (i, 0)),
        compiler_params=pltpu.CompilerParams(
            dimension_semantics=("parallel",)),
    )(jnp.asarray(kin), jnp.asarray(isy), jnp.asarray(base_all))

    # layout plumbing (outside the kernel, runs once per shape): each level's
    # region starts at a tile boundary; slice its valid prefix and concatenate.
    flat_out = out_flat.reshape(-1)
    parts = []
    for l, lt in zip(levels, level_tiles):
        off = lt["ts"] * TK * _LANES
        parts.append(flat_out[off:off + l["elems"]])
    all_anchors = jnp.concatenate(parts, axis=0)
    total_anchors = sum(l["elems"] for l in levels) // 4
    return all_anchors.reshape(1, total_anchors, 4)


# ---------------------------------------------------------------------------
# Module wrapper (mirrors torch.nn.Module Anchors)
# ---------------------------------------------------------------------------
class AnchorsPallas:
    def __init__(self, pyramid_levels=None, strides=None, sizes=None,
                 ratios=None, scales=None):
        self.pyramid_levels = [3, 4, 5, 6, 7] if pyramid_levels is None else pyramid_levels
        self.strides = [2 ** x for x in self.pyramid_levels] if strides is None else strides
        self.sizes = [2 ** (x + 2) for x in self.pyramid_levels] if sizes is None else sizes
        self.ratios = np.array([0.5, 1, 2]) if ratios is None else np.asarray(ratios)
        self.scales = (np.array([2 ** 0, 2 ** (1.0 / 3.0), 2 ** (2.0 / 3.0)])
                       if scales is None else np.asarray(scales))
        self._cache = {}   # anchors depend only on the spatial shape -> cache per (H, W)

    def __call__(self, image):
        # image: NCHW; only the spatial shape drives the anchor generation
        H, W_img = int(image.shape[2]), int(image.shape[3])
        key = (H, W_img)
        cached = self._cache.get(key)
        if cached is not None:
            return cached
        all_anchors = _anchors_for_shape(H, W_img, self.pyramid_levels,
                                         self.strides, self.sizes,
                                         self.ratios, self.scales)
        self._cache[key] = all_anchors
        return all_anchors


# ---------------------------------------------------------------------------
if __name__ == "__main__":
    key = jax.random.PRNGKey(0)
    # small NCHW image; pixel values are unused by the forward pass
    image = jax.random.normal(key, (2, 3, 32, 32), dtype=jnp.float32)

    module = AnchorsPallas()
    out = module(image)
    out = jax.block_until_ready(out)

    # numpy reference (identical math to the PyTorch module)
    image_shape = np.array(image.shape[2:])
    image_shapes = [(image_shape + 2 ** x - 1) // 2 ** x for x in module.pyramid_levels]
    ref = np.zeros((0, 4), dtype=np.float32)
    for idx in range(len(module.pyramid_levels)):
        anchors = generate_anchors(base_size=module.sizes[idx],
                                   ratios=module.ratios, scales=module.scales)
        shifted = shift_ref(image_shapes[idx], module.strides[idx], anchors)
        ref = np.append(ref, shifted, axis=0)
    ref = np.expand_dims(ref.astype(np.float32), axis=0)

    assert out.shape == ref.shape, (out.shape, ref.shape)
    assert out.dtype == jnp.float32
    np.testing.assert_allclose(np.asarray(out), ref, rtol=1e-5, atol=1e-3)

    # repeated call with the same spatial shape hits the cache (no kernel launch)
    out2 = module(image)
    assert out2 is out

    print("KERNEL_OK")
</pallas_src>

<mosaic_0001>
module attributes {stable_mosaic.version = 11 : i64} {
  func.func @kernel(%arg0: i32, %arg1: memref<72x128xi32, #tpu.memory_space<vmem>>, %arg2: memref<72x128xf32, #tpu.memory_space<vmem>>, %arg3: memref<1x72x128xf32, #tpu.memory_space<vmem>>, %arg4: memref<72x128xf32, #tpu.memory_space<vmem>>) attributes {dimension_semantics = [#tpu.dimension_semantics<parallel>], iteration_bounds = array<i64: 5>, scalar_prefetch = 0 : i64, scratch_operands = 0 : i64, tpu.core_type = #tpu.core_type<tc>, window_params = [{pipeline_mode = #tpu.pipeline_mode<synchronous>, transform_indices = @transform_0, window_bounds = array<i64: 72, 128>}, {pipeline_mode = #tpu.pipeline_mode<synchronous>, transform_indices = @transform_1, window_bounds = array<i64: 72, 128>}, {transform_indices = @transform_2, window_bounds = array<i64: 1, 72, 128>}, {transform_indices = @transform_3, window_bounds = array<i64: 72, 128>}]} {
    %c0_i32 = arith.constant 0 : i32
    %0 = arith.cmpi sge, %arg0, %c0_i32 : i32
    %c1_i32 = arith.constant 1 : i32
    %1 = arith.cmpi slt, %arg0, %c1_i32 : i32
    %2 = arith.andi %0, %1 : i1
    %3 = arith.extui %2 : i1 to i32
    %c0_i32_0 = arith.constant 0 : i32
    %4 = arith.cmpi ne, %3, %c0_i32_0 : i32
    scf.if %4 {
      %c0 = arith.constant 0 : index
      %c0_9 = arith.constant 0 : index
      %25 = vector.load %arg1[%c0, %c0_9] : memref<72x128xi32, #tpu.memory_space<vmem>>, vector<72x128xi32>
      %c2_i32_10 = arith.constant 2 : i32
      %26 = vector.broadcast %c2_i32_10 : i32 to vector<72x128xi32>
      %27 = arith.shrsi %25, %26 : vector<72x128xi32>
      %c3_i32_11 = arith.constant 3 : i32
      %28 = vector.broadcast %c3_i32_11 : i32 to vector<72x128xi32>
      %29 = arith.andi %25, %28 : vector<72x128xi32>
      %30 = arith.sitofp %29 : vector<72x128xi32> to vector<72x128xf32>
      %cst = arith.constant 5.000000e-01 : f32
      %31 = vector.broadcast %cst : f32 to vector<72x128xf32>
      %32 = arith.addf %30, %31 : vector<72x128xf32>
      %cst_12 = arith.constant 8.000000e+00 : f32
      %33 = vector.broadcast %cst_12 : f32 to vector<72x128xf32>
      %34 = arith.mulf %32, %33 : vector<72x128xf32>
      %35 = arith.sitofp %27 : vector<72x128xi32> to vector<72x128xf32>
      %cst_13 = arith.constant 5.000000e-01 : f32
      %36 = vector.broadcast %cst_13 : f32 to vector<72x128xf32>
      %37 = arith.addf %35, %36 : vector<72x128xf32>
      %cst_14 = arith.constant 8.000000e+00 : f32
      %38 = vector.broadcast %cst_14 : f32 to vector<72x128xf32>
      %39 = arith.mulf %37, %38 : vector<72x128xf32>
      %c0_15 = arith.constant 0 : index
      %c0_16 = arith.constant 0 : index
      %40 = vector.load %arg2[%c0_15, %c0_16] : memref<72x128xf32, #tpu.memory_space<vmem>>, vector<72x128xf32>
      %cst_17 = arith.constant 5.000000e-01 : f32
      %41 = vector.broadcast %cst_17 : f32 to vector<72x128xf32>
      %42 = arith.cmpf ogt, %40, %41 : vector<72x128xf32>
      %43 = arith.select %42, %39, %34 : vector<72x128xi1>, vector<72x128xf32>
      %c0_18 = arith.constant 0 : index
      %c0_19 = arith.constant 0 : index
      %c0_20 = arith.constant 0 : index
      %44 = vector.load %arg3[%c0_18, %c0_19, %c0_20] : memref<1x72x128xf32, #tpu.memory_space<vmem>>, vector<1x72x128xf32>
      %45 = vector.shape_cast %44 : vector<1x72x128xf32> to vector<72x128xf32>
      %46 = arith.addf %45, %43 : vector<72x128xf32>
      %c0_21 = arith.constant 0 : index
      %c0_22 = arith.constant 0 : index
      %47 = vector.load %arg4[%c0_21, %c0_22] : memref<72x128xf32, #tpu.memory_space<vmem>>, vector<72x128xf32>
      tpu.vector_store %arg4[%c0_21, %c0_22], %46 {strides = array<i32>} : memref<72x128xf32, #tpu.memory_space<vmem>>, vector<72x128xf32>,
    } else {
    }
    %c1_i32_1 = arith.constant 1 : i32
    %5 = arith.cmpi sge, %arg0, %c1_i32_1 : i32
    %c2_i32 = arith.constant 2 : i32
    %6 = arith.cmpi slt, %arg0, %c2_i32 : i32
    %7 = arith.andi %5, %6 : i1
    %8 = arith.extui %7 : i1 to i32
    %c0_i32_2 = arith.constant 0 : i32
    %9 = arith.cmpi ne, %8, %c0_i32_2 : i32
    scf.if %9 {
      %c0 = arith.constant 0 : index
      %c0_9 = arith.constant 0 : index
      %25 = vector.load %arg1[%c0, %c0_9] : memref<72x128xi32, #tpu.memory_space<vmem>>, vector<72x128xi32>
      %c1_i32_10 = arith.constant 1 : i32
      %26 = vector.broadcast %c1_i32_10 : i32 to vector<72x128xi32>
      %27 = arith.shrsi %25, %26 : vector<72x128xi32>
      %c1_i32_11 = arith.constant 1 : i32
      %28 = vector.broadcast %c1_i32_11 : i32 to vector<72x128xi32>
      %29 = arith.andi %25, %28 : vector<72x128xi32>
      %30 = arith.sitofp %29 : vector<72x128xi32> to vector<72x128xf32>
      %cst = arith.constant 5.000000e-01 : f32
      %31 = vector.broadcast %cst : f32 to vector<72x128xf32>
      %32 = arith.addf %30, %31 : vector<72x128xf32>
      %cst_12 = arith.constant 1.600000e+01 : f32
      %33 = vector.broadcast %cst_12 : f32 to vector<72x128xf32>
      %34 = arith.mulf %32, %33 : vector<72x128xf32>
      %35 = arith.sitofp %27 : vector<72x128xi32> to vector<72x128xf32>
      %cst_13 = arith.constant 5.000000e-01 : f32
      %36 = vector.broadcast %cst_13 : f32 to vector<72x128xf32>
      %37 = arith.addf %35, %36 : vector<72x128xf32>
      %cst_14 = arith.constant 1.600000e+01 : f32
      %38 = vector.broadcast %cst_14 : f32 to vector<72x128xf32>
      %39 = arith.mulf %37, %38 : vector<72x128xf32>
      %c0_15 = arith.constant 0 : index
      %c0_16 = arith.constant 0 : index
      %40 = vector.load %arg2[%c0_15, %c0_16] : memref<72x128xf32, #tpu.memory_space<vmem>>, vector<72x128xf32>
      %cst_17 = arith.constant 5.000000e-01 : f32
      %41 = vector.broadcast %cst_17 : f32 to vector<72x128xf32>
      %42 = arith.cmpf ogt, %40, %41 : vector<72x128xf32>
      %43 = arith.select %42, %39, %34 : vector<72x128xi1>, vector<72x128xf32>
      %c0_18 = arith.constant 0 : index
      %c0_19 = arith.constant 0 : index
      %c0_20 = arith.constant 0 : index
      %44 = vector.load %arg3[%c0_18, %c0_19, %c0_20] : memref<1x72x128xf32, #tpu.memory_space<vmem>>, vector<1x72x128xf32>
      %45 = vector.shape_cast %44 : vector<1x72x128xf32> to vector<72x128xf32>
      %46 = arith.addf %45, %43 : vector<72x128xf32>
      %c0_21 = arith.constant 0 : index
      %c0_22 = arith.constant 0 : index
      %47 = vector.load %arg4[%c0_21, %c0_22] : memref<72x128xf32, #tpu.memory_space<vmem>>, vector<72x128xf32>
      tpu.vector_store %arg4[%c0_21, %c0_22], %46 {strides = array<i32>} : memref<72x128xf32, #tpu.memory_space<vmem>>, vector<72x128xf32>,
    } else {
    }
    %c2_i32_3 = arith.constant 2 : i32
    %10 = arith.cmpi sge, %arg0, %c2_i32_3 : i32
    %c3_i32 = arith.constant 3 : i32
    %11 = arith.cmpi slt, %arg0, %c3_i32 : i32
    %12 = arith.andi %10, %11 : i1
    %13 = arith.extui %12 : i1 to i32
    %c0_i32_4 = arith.constant 0 : i32
    %14 = arith.cmpi ne, %13, %c0_i32_4 : i32
    scf.if %14 {
      %c0 = arith.constant 0 : index
      %c0_9 = arith.constant 0 : index
      %25 = vector.load %arg1[%c0, %c0_9] : memref<72x128xi32, #tpu.memory_space<vmem>>, vector<72x128xi32>
      %c0_i32_10 = arith.constant 0 : i32
      %26 = vector.broadcast %c0_i32_10 : i32 to vector<72x128xi32>
      %27 = arith.shrsi %25, %26 : vector<72x128xi32>
      %c0_i32_11 = arith.constant 0 : i32
      %28 = vector.broadcast %c0_i32_11 : i32 to vector<72x128xi32>
      %29 = arith.andi %25, %28 : vector<72x128xi32>
      %30 = arith.sitofp %29 : vector<72x128xi32> to vector<72x128xf32>
      %cst = arith.constant 5.000000e-01 : f32
      %31 = vector.broadcast %cst : f32 to vector<72x128xf32>
      %32 = arith.addf %30, %31 : vector<72x128xf32>
      %cst_12 = arith.constant 3.200000e+01 : f32
      %33 = vector.broadcast %cst_12 : f32 to vector<72x128xf32>
      %34 = arith.mulf %32, %33 : vector<72x128xf32>
      %35 = arith.sitofp %27 : vector<72x128xi32> to vector<72x128xf32>
      %cst_13 = arith.constant 5.000000e-01 : f32
      %36 = vector.broadcast %cst_13 : f32 to vector<72x128xf32>
      %37 = arith.addf %35, %36 : vector<72x128xf32>
      %cst_14 = arith.constant 3.200000e+01 : f32
      %38 = vector.broadcast %cst_14 : f32 to vector<72x128xf32>
      %39 = arith.mulf %37, %38 : vector<72x128xf32>
      %c0_15 = arith.constant 0 : index
      %c0_16 = arith.constant 0 : index
      %40 = vector.load %arg2[%c0_15, %c0_16] : memref<72x128xf32, #tpu.memory_space<vmem>>, vector<72x128xf32>
      %cst_17 = arith.constant 5.000000e-01 : f32
      %41 = vector.broadcast %cst_17 : f32 to vector<72x128xf32>
      %42 = arith.cmpf ogt, %40, %41 : vector<72x128xf32>
      %43 = arith.select %42, %39, %34 : vector<72x128xi1>, vector<72x128xf32>
      %c0_18 = arith.constant 0 : index
      %c0_19 = arith.constant 0 : index
      %c0_20 = arith.constant 0 : index
      %44 = vector.load %arg3[%c0_18, %c0_19, %c0_20] : memref<1x72x128xf32, #tpu.memory_space<vmem>>, vector<1x72x128xf32>
      %45 = vector.shape_cast %44 : vector<1x72x128xf32> to vector<72x128xf32>
      %46 = arith.addf %45, %43 : vector<72x128xf32>
      %c0_21 = arith.constant 0 : index
      %c0_22 = arith.constant 0 : index
      %47 = vector.load %arg4[%c0_21, %c0_22] : memref<72x128xf32, #tpu.memory_space<vmem>>, vector<72x128xf32>
      tpu.vector_store %arg4[%c0_21, %c0_22], %46 {strides = array<i32>} : memref<72x128xf32, #tpu.memory_space<vmem>>, vector<72x128xf32>,
    } else {
    }
    %c3_i32_5 = arith.constant 3 : i32
    %15 = arith.cmpi sge, %arg0, %c3_i32_5 : i32
    %c4_i32 = arith.constant 4 : i32
    %16 = arith.cmpi slt, %arg0, %c4_i32 : i32
    %17 = arith.andi %15, %16 : i1
    %18 = arith.extui %17 : i1 to i32
    %c0_i32_6 = arith.constant 0 : i32
    %19 = arith.cmpi ne, %18, %c0_i32_6 : i32
    scf.if %19 {
      %c0 = arith.constant 0 : index
      %c0_9 = arith.constant 0 : index
      %25 = vector.load %arg1[%c0, %c0_9] : memref<72x128xi32, #tpu.memory_space<vmem>>, vector<72x128xi32>
      %c0_i32_10 = arith.constant 0 : i32
      %26 = vector.broadcast %c0_i32_10 : i32 to vector<72x128xi32>
      %27 = arith.shrsi %25, %26 : vector<72x128xi32>
      %c0_i32_11 = arith.constant 0 : i32
      %28 = vector.broadcast %c0_i32_11 : i32 to vector<72x128xi32>
      %29 = arith.andi %25, %28 : vector<72x128xi32>
      %30 = arith.sitofp %29 : vector<72x128xi32> to vector<72x128xf32>
      %cst = arith.constant 5.000000e-01 : f32
      %31 = vector.broadcast %cst : f32 to vector<72x128xf32>
      %32 = arith.addf %30, %31 : vector<72x128xf32>
      %cst_12 = arith.constant 6.400000e+01 : f32
      %33 = vector.broadcast %cst_12 : f32 to vector<72x128xf32>
      %34 = arith.mulf %32, %33 : vector<72x128xf32>
      %35 = arith.sitofp %27 : vector<72x128xi32> to vector<72x128xf32>
      %cst_13 = arith.constant 5.000000e-01 : f32
      %36 = vector.broadcast %cst_13 : f32 to vector<72x128xf32>
      %37 = arith.addf %35, %36 : vector<72x128xf32>
      %cst_14 = arith.constant 6.400000e+01 : f32
      %38 = vector.broadcast %cst_14 : f32 to vector<72x128xf32>
      %39 = arith.mulf %37, %38 : vector<72x128xf32>
      %c0_15 = arith.constant 0 : index
      %c0_16 = arith.constant 0 : index
      %40 = vector.load %arg2[%c0_15, %c0_16] : memref<72x128xf32, #tpu.memory_space<vmem>>, vector<72x128xf32>
      %cst_17 = arith.constant 5.000000e-01 : f32
      %41 = vector.broadcast %cst_17 : f32 to vector<72x128xf32>
      %42 = arith.cmpf ogt, %40, %41 : vector<72x128xf32>
      %43 = arith.select %42, %39, %34 : vector<72x128xi1>, vector<72x128xf32>
      %c0_18 = arith.constant 0 : index
      %c0_19 = arith.constant 0 : index
      %c0_20 = arith.constant 0 : index
      %44 = vector.load %arg3[%c0_18, %c0_19, %c0_20] : memref<1x72x128xf32, #tpu.memory_space<vmem>>, vector<1x72x128xf32>
      %45 = vector.shape_cast %44 : vector<1x72x128xf32> to vector<72x128xf32>
      %46 = arith.addf %45, %43 : vector<72x128xf32>
      %c0_21 = arith.constant 0 : index
      %c0_22 = arith.constant 0 : index
      %47 = vector.load %arg4[%c0_21, %c0_22] : memref<72x128xf32, #tpu.memory_space<vmem>>, vector<72x128xf32>
      tpu.vector_store %arg4[%c0_21, %c0_22], %46 {strides = array<i32>} : memref<72x128xf32, #tpu.memory_space<vmem>>, vector<72x128xf32>,
    } else {
    }
    %c4_i32_7 = arith.constant 4 : i32
    %20 = arith.cmpi sge, %arg0, %c4_i32_7 : i32
    %c5_i32 = arith.constant 5 : i32
    %21 = arith.cmpi slt, %arg0, %c5_i32 : i32
    %22 = arith.andi %20, %21 : i1
    %23 = arith.extui %22 : i1 to i32
    %c0_i32_8 = arith.constant 0 : i32
    %24 = arith.cmpi ne, %23, %c0_i32_8 : i32
    scf.if %24 {
      %c0 = arith.constant 0 : index
      %c0_9 = arith.constant 0 : index
      %25 = vector.load %arg1[%c0, %c0_9] : memref<72x128xi32, #tpu.memory_space<vmem>>, vector<72x128xi32>
      %c0_i32_10 = arith.constant 0 : i32
      %26 = vector.broadcast %c0_i32_10 : i32 to vector<72x128xi32>
      %27 = arith.shrsi %25, %26 : vector<72x128xi32>
      %c0_i32_11 = arith.constant 0 : i32
      %28 = vector.broadcast %c0_i32_11 : i32 to vector<72x128xi32>
      %29 = arith.andi %25, %28 : vector<72x128xi32>
      %30 = arith.sitofp %29 : vector<72x128xi32> to vector<72x128xf32>
      %cst = arith.constant 5.000000e-01 : f32
      %31 = vector.broadcast %cst : f32 to vector<72x128xf32>
      %32 = arith.addf %30, %31 : vector<72x128xf32>
      %cst_12 = arith.constant 1.280000e+02 : f32
      %33 = vector.broadcast %cst_12 : f32 to vector<72x128xf32>
      %34 = arith.mulf %32, %33 : vector<72x128xf32>
      %35 = arith.sitofp %27 : vector<72x128xi32> to vector<72x128xf32>
      %cst_13 = arith.constant 5.000000e-01 : f32
      %36 = vector.broadcast %cst_13 : f32 to vector<72x128xf32>
      %37 = arith.addf %35, %36 : vector<72x128xf32>
      %cst_14 = arith.constant 1.280000e+02 : f32
      %38 = vector.broadcast %cst_14 : f32 to vector<72x128xf32>
      %39 = arith.mulf %37, %38 : vector<72x128xf32>
      %c0_15 = arith.constant 0 : index
      %c0_16 = arith.constant 0 : index
      %40 = vector.load %arg2[%c0_15, %c0_16] : memref<72x128xf32, #tpu.memory_space<vmem>>, vector<72x128xf32>
      %cst_17 = arith.constant 5.000000e-01 : f32
      %41 = vector.broadcast %cst_17 : f32 to vector<72x128xf32>
      %42 = arith.cmpf ogt, %40, %41 : vector<72x128xf32>
      %43 = arith.select %42, %39, %34 : vector<72x128xi1>, vector<72x128xf32>
      %c0_18 = arith.constant 0 : index
      %c0_19 = arith.constant 0 : index
      %c0_20 = arith.constant 0 : index
      %44 = vector.load %arg3[%c0_18, %c0_19, %c0_20] : memref<1x72x128xf32, #tpu.memory_space<vmem>>, vector<1x72x128xf32>
      %45 = vector.shape_cast %44 : vector<1x72x128xf32> to vector<72x128xf32>
      %46 = arith.addf %45, %43 : vector<72x128xf32>
      %c0_21 = arith.constant 0 : index
      %c0_22 = arith.constant 0 : index
      %47 = vector.load %arg4[%c0_21, %c0_22] : memref<72x128xf32, #tpu.memory_space<vmem>>, vector<72x128xf32>
      tpu.vector_store %arg4[%c0_21, %c0_22], %46 {strides = array<i32>} : memref<72x128xf32, #tpu.memory_space<vmem>>, vector<72x128xf32>,
    } else {
    }
    return
  }
  func.func @transform_0(%arg0: i32) -> (i32, i32) {
    %c0_i32 = arith.constant 0 : i32
    %c0_i32_0 = arith.constant 0 : i32
    %c0_i32_1 = arith.constant 0 : i32
    return %c0_i32, %c0_i32_0 : i32, i32
  }
  func.func @transform_1(%arg0: i32) -> (i32, i32) {
    %c0_i32 = arith.constant 0 : i32
    %c0_i32_0 = arith.constant 0 : i32
    %c0_i32_1 = arith.constant 0 : i32
    return %c0_i32, %c0_i32_0 : i32, i32
  }
  func.func @transform_2(%arg0: i32) -> (i32, i32, i32) {
    %c1_i32 = arith.constant 1 : i32
    %0 = arith.cmpi sge, %arg0, %c1_i32 : i32
    %1 = arith.extui %0 : i1 to i32
    %c0_i32 = arith.constant 0 : i32
    %2 = arith.addi %c0_i32, %1 : i32
    %c2_i32 = arith.constant 2 : i32
    %3 = arith.cmpi sge, %arg0, %c2_i32 : i32
    %4 = arith.extui %3 : i1 to i32
    %5 = arith.addi %2, %4 : i32
    %c3_i32 = arith.constant 3 : i32
    %6 = arith.cmpi sge, %arg0, %c3_i32 : i32
    %7 = arith.extui %6 : i1 to i32
    %8 = arith.addi %5, %7 : i32
    %c4_i32 = arith.constant 4 : i32
    %9 = arith.cmpi sge, %arg0, %c4_i32 : i32
    %10 = arith.extui %9 : i1 to i32
    %11 = arith.addi %8, %10 : i32
    %c0_i32_0 = arith.constant 0 : i32
    %c0_i32_1 = arith.constant 0 : i32
    %c0_i32_2 = arith.constant 0 : i32
    return %11, %c0_i32_0, %c0_i32_1 : i32, i32, i32
  }
  func.func @transform_3(%arg0: i32) -> (i32, i32) {
    %c0_i32 = arith.constant 0 : i32
    %c0_i32_0 = arith.constant 0 : i32
    return %arg0, %c0_i32 : i32, i32
  }
}

</mosaic_0001>

<bundles_post_ra>
// kernel: tpu_custom_call.1
= control target key start
LH: loop header
LB: loop body
LE: loop exit
PB: predicated region body
PF: predicated region fallthrough
CT: control target
= control target key end

     0   :  { %s1686_s0 = inlined_call_operand.hbm [shape: s32[72,128], index: 0, kind: input, shape index: {}]   ;;  %s1687_s1 = inlined_call_operand.hbm [shape: f32[72,128], index: 1, kind: input, shape index: {}]   ;;  %s1688_s2 = inlined_call_operand.hbm [shape: f32[5,72,128], index: 2, kind: input, shape index: {}]   ;;  %s1689_s3 = inlined_call_operand.hbm [shape: f32[360,128], index: 3, kind: output, shape index: {}]  }
   0x1   :  { %1700 = sst [smem:[#allocation17_spill]] %s1686_s0 }
   0x2   :  { %1701 = sst [smem:[#allocation18_spill]] %s1687_s1 }
   0x3   :  { %8 = vsyncpa [#allocation3], 0 }
   0x4   :  { %9 = vsyncpa [#allocation6], 0 }
   0x5   :  { %10 = vsyncpa [#allocation4], 0 }
   0x6   :  { %12 = vsyncpa [#allocation4 + $0x1], 0  ;;  %s1266_s12 = smov 0   ;;  %s1268_s13 = smov 0  }
   0x7   :  { %s1270_s14 = smov 0   ;;  %s1272_s15 = smov 0  }
   0x8   :  { %s1274_s16 = smov 0   ;;  %s1276_s17 = smov 0  }
   0x9   :  { %s1278_s18 = smov 0  }
   0xa LB: > { %1702 = sst [smem:[#allocation13_spill]] %s1212_s12  ;;  %s1300_s19 = sadd.s32 4294967295, %s1236_s18   ;;  %s1236_s18 = sphi %s1278_s18, %s1737_s18   ;;  %s1232_s17 = sphi %s1276_s17, %s1736_s17   ;;  %s1228_s16 = sphi %s1274_s16, %s1735_s16   ;;  %s1224_s15 = sphi %s1272_s15, %s1734_s15   ;;  %s1220_s14 = sphi %s1270_s14, %s1731_s14   ;;  %s1216_s13 = sphi %s1268_s13, %s1733_s13   ;;  %s1212_s12 = sphi %s1266_s12, %s1732_s12  }
   0xb   : > { %1703 = sst [smem:[#allocation14_spill]] %s1220_s14  ;;  %s940_s20 = sadd.s32 4294967294, %s1236_s18  }
   0xc   : > { %s1304_s21 = sadd.s32 1, %s1236_s18   ;;  %p64_p0 = scmp.ge.s32.totalorder %s1236_s18, 1 }
   0xd   : > { %p96_p1 = scmp.ne.s32.totalorder %s1232_s17, %s1228_s16  ;;  %p97_p2 = scmp.eq.s32.totalorder %s1236_s18, 0 }
   0xe   : > { %s1312_s22 = scalar_select %p64_p0, 1, 0 }
   0xf   : > { %p1314_p3 = por %p97_p2, %p96_p1  ;;  %p102_p4 = scmp.ne.s32.totalorder %s1228_s16, %s1224_s15 }
  0x10   : > { %p1690_p5 = scmp.eq.s32.totalorder %s1300_s19, 0  ;;  %s112_s24 = ssub.s32 %s1236_s18, %s1304_s21 }
  0x11   : > { %s1704_s23 = scalar_select %p1314_p3, 1, 0 }
  0x12   : > { %p113_p6 = scmp.eq.s32.totalorder %s112_s24, 0  ;;  %s115_s25 = sadd.s32 1, %s1220_s14 }
  0x13   : > { %p1325_p7 = por %p1690_p5, %p102_p4  ;;  %p125_p8 = scmp.ne.s32.totalorder %s1220_s14, %s1216_s13 }
  0x14   : > { %s1332_s27 = scalar_select %p113_p6, %s1220_s14, %s115_s25  }
  0x15   : > { %s1705_s26 = scalar_select %p1325_p7, 1, 0 }
  0x16   : > { %1706 = sst [smem:[#allocation15_spill]] %s1332_s27  ;;  %p126_p9 = scmp.eq.s32.totalorder %s1300_s19, 4 }
  0x17   : > { %p131_p10 = scmp.ne.s32.totalorder %s1216_s13, %s1212_s12  ;;  %p132_p11 = scmp.eq.s32.totalorder %s940_s20, 4 }
  0x18   : > { %p139_p12 = scmp.lt.s32.totalorder %s1236_s18, 6  ;;  %p1338_p13 = por %p126_p9, %p125_p8 }
  0x19   : > { %p1342_p1 = por %p132_p11, %p131_p10  ;;  %s1238_s4 = smov [#allocation2]  }
  0x1a   : > { %s1707_s28 = scalar_select %p1338_p13, 1, 0 }
  0x1b   : > { %s1708_s29 = scalar_select %p1342_p1, 1, 0 }
  0x1c   : > { %p1348_p2 = pnand %p139_p12, %p64_p0  ;;  %s151_s5 = sshll.u32 %s1238_s4, 4  ;;  %s152_s5 = int_to_ptr.vmem [resolvable:$true] %s151_s5 }
  0x1d   : > { %1709 = sst [smem:[#allocation16_spill]] %s1708_s29  ;;  %s1239_s7 = smov [#allocation5]  }
  0x1e   : > { %s1710_s30 = scalar_select %p1348_p2, 1, 0 }
  0x1f   : > { %p969_p4 = pneg %p1348_p2  ;;  %s164_s8 = sshll.u32 %s1239_s7, 4  ;;  %s165_s8 = int_to_ptr.vmem [resolvable:$true] %s164_s8 }
  0x20   : > { %s1712_s0 = sld [smem:[#allocation17_spill]] }
  0x21   : > { %p1356_p6 = pnand %p969_p4, %p1690_p5 }
  0x23   : > { %p1054_p9 = pneg %p1356_p6 }
  0x26   : > { %s1052_s11 = scalar_lea.hbm %s1712_s0, 1152 }
  0x27   : > { %p1053_p0 = scmp.ne.s32.totalorder %s1712_s0, %s1052_s11  ;;  %p1059_p12 = scmp.lt.u32.totalorder %s1052_s11, %s1712_s0 }
  0x29   : > { %p1055_p10 = pnand %p1054_p9, %p1053_p0 }
  0x2b   : > { %p1056_p11 = pneg %p1055_p10 }
  0x2d   : > { %p1061_p4 = pnand %p1059_p12, %p1056_p11 }
  0x2f   : > { %1064 = shalt.err (!%p1061_p4)
}
  0x30   : > { %s1065_s4 = scalar_lea.vmem %s152_s5, 1152  ;;  %p1073_p13 = scmp.lt.s32.totalorder %s152_s5, %s152_s5 }
  0x31   : > { %p1066_p5 = scmp.ne.s32.totalorder %s152_s5, %s1065_s4  ;;  %p1074_p7 = scmp.lt.s32.totalorder %s1065_s4, %s1065_s4 }
  0x33   : > { %p1068_p8 = pnand %p1066_p5, %p1054_p9  ;;  %p1075_p2 = por %p1074_p7, %p1073_p13 }
  0x35   : > { %p1069_p1 = pneg %p1068_p8 }
  0x37   : > { %p1076_p3 = pnand %p1075_p2, %p1069_p1 }
  0x39   : > { %1079 = shalt.err (!%p1076_p3)
}
  0x3a   : > { %s1695_s7 = smov 128   ;;  %s1696_s9 = smov 8  }
  0x3b   : > { %972 = dma.hbm_to_vmem [thread:$0]  (!%p1356_p6), %s1712_s0, 1152, %s152_s5, [#allocation3], %s1695_s7, %s1695_s7, %s1696_s9  }
  0x3c   : > { %p1713_p5 = scmp.ne.s32.totalorder %s1704_s23, 0  ;;  %p1714_p8 = scmp.lt.s32.totalorder %s1236_s18, 5 }
  0x3d   : > { %s1716_s1 = sld [smem:[#allocation18_spill]] }
  0x3e   : > { %p1390_p0 = pnand %p1714_p8, %p1713_p5 }
  0x40   : > { %s1715_s15 = scalar_select %p1390_p0, 1, 0 }
  0x43   : > { %s1080_s25 = scalar_lea.hbm %s1716_s1, 1152 }
  0x44   : > { %p1081_p3 = scmp.ne.s32.totalorder %s1716_s1, %s1080_s25  ;;  %p1087_p1 = scmp.lt.u32.totalorder %s1080_s25, %s1716_s1 }
  0x46   : > { %p1083_p7 = pnand %p1081_p3, %p1054_p9 }
  0x48   : > { %p1084_p13 = pneg %p1083_p7 }
  0x4a   : > { %p1089_p2 = pnand %p1087_p1, %p1084_p13 }
  0x4c   : > { %1092 = shalt.err (!%p1089_p2)
}
  0x4d   : > { %s1093_s10 = scalar_lea.vmem %s165_s8, 1152  ;;  %p1101_p4 = scmp.lt.s32.totalorder %s165_s8, %s165_s8 }
  0x4e   : > { %p1094_p10 = scmp.ne.s32.totalorder %s165_s8, %s1093_s10  ;;  %p1102_p5 = scmp.lt.s32.totalorder %s1093_s10, %s1093_s10 }
  0x50   : > { %p1096_p11 = pnand %p1094_p10, %p1054_p9  ;;  %p1103_p8 = por %p1102_p5, %p1101_p4 }
  0x52   : > { %p1097_p12 = pneg %p1096_p11 }
  0x54   : > { %p1104_p0 = pnand %p1103_p8, %p1097_p12 }
  0x56   : > { %1107 = shalt.err (!%p1104_p0)
}
  0x57   : > { %975 = dma.hbm_to_vmem [thread:$0]  (!%p1356_p6), %s1716_s1, 1152, %s165_s8, [#allocation6], %s1695_s7, %s1695_s7, %s1696_s9  }
  0x58   : > { %p66_p9 = scmp.ge.s32.totalorder %s1236_s18, 2  ;;  %p69_p0 = scmp.ge.s32.totalorder %s1236_s18, 3 }
  0x59   : > { %p72_p3 = scmp.ge.s32.totalorder %s1236_s18, 4  ;;  %p75_p7 = scmp.ge.s32.totalorder %s1304_s21, 1 }
  0x5a   : > { %s67_s6 = scalar_select %p66_p9, 1, 0 }
  0x5b   : > { %s70_s20 = scalar_select %p69_p0, 1, 0 }
  0x5c   : > { %s68_s24 = sadd.s32 %s67_s6, %s1312_s22  ;;  %p77_p13 = scmp.ge.s32.totalorder %s1304_s21, 2 }
  0x5d   : > { %s73_s25 = scalar_select %p72_p3, 1, 0 }
  0x5e   : > { %s76_s4 = scalar_select %p75_p7, 1, 0 }
  0x5f   : > { %s71_s5 = sadd.s32 %s70_s20, %s68_s24  ;;  %p80_p1 = scmp.ge.s32.totalorder %s1304_s21, 3 }
  0x60   : > { %s78_s23 = scalar_select %p77_p13, 1, 0 }
  0x61   : > { %s81_s8 = scalar_select %p80_p1, 1, 0 }
  0x62   : > { %s79_s10 = sadd.s32 %s78_s23, %s76_s4  ;;  %p83_p6 = scmp.ge.s32.totalorder %s1304_s21, 4 }
  0x63   : > { %s74_s27 = sadd.s32 %s73_s25, %s71_s5  ;;  %s82_s11 = sadd.s32 %s81_s8, %s79_s10 }
  0x64   : > { %s84_s7 = scalar_select %p83_p6, 1, 0 }
  0x65   : > { %s89_s9 = sadd.s32 1, %s1232_s17  ;;  %s180_s0 = sand.u32 1, %s1232_s17  }
  0x66   : > { %s85_s1 = sadd.s32 %s84_s7, %s82_s11  ;;  %s178_s22 = sand.u32 1, %s1236_s18  }
  0x67   : > { %s86_s6 = ssub.s32 %s74_s27, %s85_s1  ;;  %s953_s14 = smul.u32 72, %s180_s0 }
  0x68   : > { %p87_p2 = scmp.eq.s32.totalorder %s86_s6, 0  ;;  %s954_s29 = smul.u32 1152, %s74_s27 }
  0x69   : > { %s182_s25 = scalar_lea.vmem [#allocation7], %s953_s14  ;;  %s1440_s7 = scalar_lea.sflag [#allocation3], %s178_s22 }
  0x6a   : > { %s1431_s20 = scalar_select %p87_p2, %s1232_s17, %s89_s9  }
  0x6b   : > { %s1436_s4 = scalar_lea.hbm %s1688_s2, %s954_s29  ;;  %s200_s5 = sshll.u32 %s182_s25, 4  ;;  %s1438_s5 = int_to_ptr.vmem [resolvable:$true] %s200_s5 }
  0x6c   : > { %s1108_s0 = scalar_lea.hbm %s1436_s4, 1152  ;;  %p1717_p11 = scmp.ne.s32.totalorder %s1715_s15, 0 }
  0x6d   : > { %p1109_p10 = scmp.ne.s32.totalorder %s1436_s4, %s1108_s0  ;;  %s1113_s29 = scalar_lea.hbm %s1688_s2, 5760 }
  0x6e   : > { %p1110_p12 = pneg %p1717_p11  ;;  %p1114_p8 = scmp.lt.u32.totalorder %s1436_s4, %s1688_s2 }
  0x6f   : > { %p1115_p0 = scmp.lt.u32.totalorder %s1113_s29, %s1108_s0  ;;  %p1117_p7 = scmp.lt.u32.totalorder %s1108_s0, %s1436_s4 }
  0x70   : > { %p1111_p4 = pnand %p1110_p12, %p1109_p10 }
  0x71   : > { %p1116_p3 = por %p1115_p0, %p1114_p8 }
  0x72   : > { %p1112_p5 = pneg %p1111_p4 }
  0x73   : > { %p1118_p13 = por %p1117_p7, %p1116_p3 }
  0x75   : > { %p1119_p1 = pnand %p1118_p13, %p1112_p5 }
  0x77   : > { %1122 = shalt.err (!%p1119_p1)
}
  0x78   : > { %s1123_s14 = scalar_lea.vmem %s1438_s5, 1152  ;;  %s1242_s8 = smov [#allocation7]  }
  0x79   : > { %p1124_p6 = scmp.ne.s32.totalorder %s1438_s5, %s1123_s14  ;;  %s1128_s10 = sshll.u32 %s1242_s8, 4  ;;  %s1129_s10 = int_to_ptr.vmem [resolvable:$false] %s1128_s10 }
  0x7a   : > { %s1130_s27 = scalar_lea.vmem %s1129_s10, 2304  ;;  %p1131_p4 = scmp.lt.s32.totalorder %s1438_s5, %s1129_s10 }
  0x7b   : > { %p1126_p2 = pnand %p1124_p6, %p1110_p12  ;;  %p1132_p8 = scmp.lt.s32.totalorder %s1130_s27, %s1123_s14 }
  0x7d   : > { %p1127_p10 = pneg %p1126_p2  ;;  %p1133_p0 = por %p1132_p8, %p1131_p4 }
  0x7f   : > { %p1134_p3 = pnand %p1133_p0, %p1127_p10 }
  0x81   : > { %1137 = shalt.err (!%p1134_p3)
}
  0x82   : > { %s1718_s11 = smov 8   ;;  %s1719_s22 = smov 128  }
  0x83   : > { %979 = dma.hbm_to_vmem [thread:$0]  (!%p1717_p11), %s1436_s4, 1152, %s1438_s5, %s1440_s7, %s1719_s22, %s1719_s22, %s1718_s11  }
  0x84   : > { %p1720_p12 = scmp.ne.s32.totalorder %s1710_s30, 0 }
  0x85   : > { %p1721_p5 = scmp.eq.s32.totalorder (!%p1720_p12), %s1300_s19, 0 }
  0x86   : > { %212 = sbr.rel (%p1720_p12) target bundleno = 321 (0x141), region = 32 }
  0x8d   : > { %1195 = dma.done.wait (%p1721_p5), [#allocation3], 1152   ;;  %p1722_p7 = pmov %p1721_p5 }
  0x8e   : > { %p1723_p13 = pmov %p1721_p5 }
  0x8f   : > { %1197 = vsyncadd (%p1722_p7), [#allocation3], 4294966144 }
  0x90   : > { %1199 = dma.done.wait (%p1723_p13), [#allocation6], 1152   ;;  %p1724_p1 = pmov %p1721_p5 }
  0x91   : > { %s222_s15 = sand.u32 1, %s1300_s19   ;;  %s224_s6 = sand.u32 1, %s1228_s16  }
  0x92   : > { %1201 = vsyncadd (%p1724_p1), [#allocation6], 4294966144  ;;  %s955_s24 = smul.u32 72, %s224_s6  ;;  %s223_s30 = scalar_lea.sflag [#allocation3], %s222_s15 }
  0x93   : > { %p1725_p11 = scmp.ne.s32.totalorder %s1705_s26, 0 }
  0x94   : > { %s1483_s4 = scalar_lea.vmem [#allocation7], %s955_s24 }
  0x95   : > { %1203 = dma.done.wait (%p1725_p11), %s223_s30, 1152  }
  0x96   : > { %1205 = vsyncadd (%p1725_p11), %s223_s30, 4294966144  ;;  %s246_s25 = sand.u32 1, %s1216_s13   ;;  %p261_p6 = scmp.ge.s32.totalorder %s1300_s19, 0 }
  0x97   : > { %s956_s5 = smul.u32 72, %s246_s25  ;;  %p262_p2 = scmp.lt.s32.totalorder %s1300_s19, 1 }
  0x99   : > { %p263_p10 = pnand %p262_p2, %p261_p6  ;;  %s1494_s7 = scalar_lea.vmem [#allocation8], %s956_s5 }
  0x9a   : > { %v267_v0 = vld [vmem:[#allocation2] sm:$0xff] (!%p263_p10)  ;;  %v348_v1 = vld [vmem:[#allocation5] sm:$0xff] (!%p263_p10)  ;;  %v349_v5 = vld [vmem:[#allocation5 + $0x8] sm:$0xff] (!%p263_p10) }
  0x9b   : > { %266 = sbr.rel (%p263_p10) target bundleno = 187 (0xbb), region = 48  ;;  %v276_v2 = vshra.s32 (!%p263_p10), %v267_v0, 2  ;;  %v285_v3 = vand.u32 (!%p263_p10), 3, %v267_v0  ;;  %v268_v4 = vld [vmem:[#allocation2 + $0x8] sm:$0xff] (!%p263_p10)  ;;  %vm357_vm0 = vcmp.gt.f32.partialorder (!%p263_p10), %v348_v1, 0.5  ;;  %vm358_vm1 = vcmp.gt.f32.partialorder (!%p263_p10), %v349_v5, 0.5 }
  0x9c   : > { %v277_v6 = vshra.s32 (!%p263_p10), %v268_v4, 2  ;;  %v286_v7 = vand.u32 (!%p263_p10), 3, %v268_v4  ;;  %v269_v8 = vld [vmem:[#allocation2 + $0x10] sm:$0xff] (!%p263_p10)  ;;  %v350_v9 = vld [vmem:[#allocation5 + $0x10] sm:$0xff] (!%p263_p10)  ;;  %v351_v26 = vld [vmem:[#allocation5 + $0x18] sm:$0xff] (!%p263_p10) }
  0x9d   : > { %v294_v10 = vcvt.s32.f32 (!%p263_p10), %v285_v3  ;;  %v321_v11 = vcvt.s32.f32 (!%p263_p10), %v276_v2  ;;  %v278_v12 = vshra.s32 (!%p263_p10), %v269_v8, 2  ;;  %v287_v13 = vand.u32 (!%p263_p10), 3, %v269_v8  ;;  %v270_v14 = vld [vmem:[#allocation2 + $0x18] sm:$0xff] (!%p263_p10)  ;;  %v271_v37 = vld [vmem:[#allocation2 + $0x20] sm:$0xff] (!%p263_p10)  ;;  %v272_v42 = vld [vmem:[#allocation2 + $0x28] sm:$0xff] (!%p263_p10) }
  0x9e   : > { %v295_v15 = vcvt.s32.f32 (!%p263_p10), %v286_v7  ;;  %v322_v16 = vcvt.s32.f32 (!%p263_p10), %v277_v6  ;;  %vm359_vm2 = vcmp.gt.f32.partialorder (!%p263_p10), %v350_v9, 0.5  ;;  %v279_v17 = vshra.s32 (!%p263_p10), %v270_v14, 2  ;;  %v375_v29 = vld [vmem:[%s1483_s4] sm:$0xff] (!%p263_p10)  ;;  %v376_v34 = vld [vmem:[%s1483_s4 + $0x8] sm:$0xff] (!%p263_p10)  ;;  %v377_v41 = vld [vmem:[%s1483_s4 + $0x10] sm:$0xff] (!%p263_p10) }
  0x9f   : > { %v303_v18 = vadd.f32 (!%p263_p10), 0.5, %v294_v10  ;;  %v330_v19 = vadd.f32 (!%p263_p10), 0.5, %v321_v11  ;;  %v296_v20 = vcvt.s32.f32 (!%p263_p10), %v287_v13  ;;  %v323_v21 = vcvt.s32.f32 (!%p263_p10), %v278_v12  ;;  %v352_v47 = vld [vmem:[#allocation5 + $0x20] sm:$0xff] (!%p263_p10)  ;;  %v273_v52 = vld [vmem:[#allocation2 + $0x30] sm:$0xff] (!%p263_p10)  ;;  %v274_v1 = vld [vmem:[#allocation2 + $0x38] sm:$0xff] (!%p263_p10) }
  0xa0   : > { %v304_v22 = vadd.f32 (!%p263_p10), 0.5, %v295_v15  ;;  %v331_v23 = vadd.f32 (!%p263_p10), 0.5, %v322_v16  ;;  %v288_v24 = vand.u32 (!%p263_p10), 3, %v270_v14  ;;  %v324_v25 = vcvt.s32.f32 (!%p263_p10), %v279_v17  ;;  %v378_v55 = vld [vmem:[%s1483_s4 + $0x18] sm:$0xff] (!%p263_p10)  ;;  %v354_v9 = vld [vmem:[#allocation5 + $0x30] sm:$0xff] (!%p263_p10) }
  0xa1   : > { %v312_v27 = vmul.f32 (!%p263_p10), 8.0, %v303_v18  ;;  %v339_v28 = vmul.f32 (!%p263_p10), 8.0, %v330_v19  ;;  %v305_v30 = vadd.f32 (!%p263_p10), 0.5, %v296_v20  ;;  %v332_v31 = vadd.f32 (!%p263_p10), 0.5, %v323_v21  ;;  %v353_v60 = vld [vmem:[#allocation5 + $0x28] sm:$0xff] (!%p263_p10)  ;;  %v275_v19 = vld [vmem:[#allocation2 + $0x40] sm:$0xff] (!%p263_p10) }
  0xa2   : > { %v313_v32 = vmul.f32 8.0, %v304_v22  ;;  %v340_v33 = vmul.f32 8.0, %v331_v23  ;;  %v297_v35 = vcvt.s32.f32 %v288_v24  ;;  %v333_v36 = vadd.f32 0.5, %v324_v25  ;;  %v379_v12 = vld [vmem:[%s1483_s4 + $0x20] sm:$0xff]  ;;  %v380_v22 = vld [vmem:[%s1483_s4 + $0x28] sm:$0xff] }
  0xa3   : > { %v366_v38 = vsel %vm357_vm0, %v339_v28, %v312_v27  ;;  %v314_v39 = vmul.f32 8.0, %v305_v30  ;;  %v341_v40 = vmul.f32 8.0, %v332_v31  ;;  %vm360_vm3 = vcmp.gt.f32.partialorder %v351_v26, 0.5  ;;  %v355_v24 = vld [vmem:[#allocation5 + $0x38] sm:$0xff] }
  0xa4   : > { %v384_v43 = vadd.f32 %v375_v29, %v366_v38  ;;  %v367_v44 = vsel %vm358_vm1, %v340_v33, %v313_v32  ;;  %v306_v45 = vadd.f32 0.5, %v297_v35  ;;  %v342_v46 = vmul.f32 8.0, %v333_v36  ;;  %v381_v28 = vld [vmem:[%s1483_s4 + $0x30] sm:$0xff] }
  0xa5   : > { %v385_v48 = vadd.f32 %v376_v34, %v367_v44  ;;  %v368_v49 = vsel %vm359_vm2, %v341_v40, %v314_v39  ;;  %v280_v50 = vshra.s32 %v271_v37, 2  ;;  %v289_v51 = vand.u32 3, %v271_v37 }
  0xa6   : > { %393 = vst [vmem:[%s1494_s7] sm:$0xff] %v384_v43  ;;  %v386_v53 = vadd.f32 %v377_v41, %v368_v49  ;;  %v315_v54 = vmul.f32 8.0, %v306_v45  ;;  %v281_v56 = vshra.s32 %v272_v42, 2  ;;  %vm361_vm4 = vcmp.gt.f32.partialorder %v352_v47, 0.5  ;;  %v356_v41 = vld [vmem:[#allocation5 + $0x40] sm:$0xff] }
  0xa7   : > { %394 = vst [vmem:[%s1494_s7 + $0x8] sm:$0xff] %v385_v48  ;;  %v298_v57 = vcvt.s32.f32 %v289_v51  ;;  %v325_v58 = vcvt.s32.f32 %v280_v50  ;;  %v290_v59 = vand.u32 3, %v272_v42  ;;  %v282_v63 = vshra.s32 %v273_v52, 2  ;;  %v382_v43 = vld [vmem:[%s1483_s4 + $0x38] sm:$0xff]  ;;  %v383_v50 = vld [vmem:[%s1483_s4 + $0x40] sm:$0xff] }
  0xa8   : > { %395 = vst [vmem:[%s1494_s7 + $0x10] sm:$0xff] %v386_v53  ;;  %v369_v61 = vsel %vm360_vm3, %v342_v46, %v315_v54  ;;  %v326_v62 = vcvt.s32.f32 %v281_v56  ;;  %v291_v0 = vand.u32 3, %v273_v52  ;;  %vm362_vm5 = vcmp.gt.f32.partialorder %v353_v60, 0.5 }
  0xa9   : > { %v387_v2 = vadd.f32 %v378_v55, %v369_v61  ;;  %v307_v3 = vadd.f32 0.5, %v298_v57  ;;  %v334_v4 = vadd.f32 0.5, %v325_v58  ;;  %v299_v5 = vcvt.s32.f32 %v290_v59 }
  0xaa   : > { %v335_v6 = vadd.f32 0.5, %v326_v62  ;;  %v300_v7 = vcvt.s32.f32 %v291_v0  ;;  %v327_v8 = vcvt.s32.f32 %v282_v63  ;;  %v283_v14 = vshra.s32 %v274_v1, 2 }
  0xab   : > { %396 = vst [vmem:[%s1494_s7 + $0x18] sm:$0xff] %v387_v2  ;;  %v316_v10 = vmul.f32 8.0, %v307_v3  ;;  %v343_v11 = vmul.f32 8.0, %v334_v4  ;;  %v308_v13 = vadd.f32 0.5, %v299_v5  ;;  %v292_v18 = vand.u32 3, %v274_v1 }
  0xac   : > { %v344_v15 = vmul.f32 8.0, %v335_v6  ;;  %v309_v16 = vadd.f32 0.5, %v300_v7  ;;  %v336_v17 = vadd.f32 0.5, %v327_v8  ;;  %vm363_vm6 = vcmp.gt.f32.partialorder %v354_v9, 0.5 }
  0xad   : > { %v370_v20 = vsel %vm361_vm4, %v343_v11, %v316_v10  ;;  %v317_v21 = vmul.f32 8.0, %v308_v13  ;;  %v328_v23 = vcvt.s32.f32 %v283_v14  ;;  %v301_v29 = vcvt.s32.f32 %v292_v18 }
  0xae   : > { %v388_v25 = vadd.f32 %v379_v12, %v370_v20  ;;  %v318_v26 = vmul.f32 8.0, %v309_v16  ;;  %v345_v27 = vmul.f32 8.0, %v336_v17  ;;  %v284_v32 = vshra.s32 %v275_v19, 2 }
  0xaf   : > { %v371_v30 = vsel %vm362_vm5, %v344_v15, %v317_v21  ;;  %v337_v31 = vadd.f32 0.5, %v328_v23  ;;  %v293_v33 = vand.u32 3, %v275_v19  ;;  %v310_v36 = vadd.f32 0.5, %v301_v29 }
  0xb0   : > { %397 = vst [vmem:[%s1494_s7 + $0x20] sm:$0xff] %v388_v25  ;;  %v389_v34 = vadd.f32 %v380_v22, %v371_v30  ;;  %v372_v35 = vsel %vm363_vm6, %v345_v27, %v318_v26  ;;  %vm364_vm7 = vcmp.gt.f32.partialorder %v355_v24, 0.5  ;;  %v329_v40 = vcvt.s32.f32 %v284_v32 }
  0xb1   : > { %v390_v37 = vadd.f32 %v381_v28, %v372_v35  ;;  %v346_v38 = vmul.f32 8.0, %v337_v31  ;;  %v302_v39 = vcvt.s32.f32 %v293_v33  ;;  %v319_v42 = vmul.f32 8.0, %v310_v36 }
  0xb2   : > { %398 = vst [vmem:[%s1494_s7 + $0x28] sm:$0xff] %v389_v34  ;;  %v338_v45 = vadd.f32 0.5, %v329_v40  ;;  %vm365_vm8 = vcmp.gt.f32.partialorder %v356_v41, 0.5 }
  0xb3   : > { %399 = vst [vmem:[%s1494_s7 + $0x30] sm:$0xff] %v390_v37  ;;  %v311_v44 = vadd.f32 0.5, %v302_v39  ;;  %v373_v46 = vsel %vm364_vm7, %v346_v38, %v319_v42 }
  0xb4   : > { %v391_v47 = vadd.f32 %v382_v43, %v373_v46  ;;  %v347_v49 = vmul.f32 8.0, %v338_v45 }
  0xb5   : > { %v320_v48 = vmul.f32 8.0, %v311_v44 }
  0xb6   : > { %400 = vst [vmem:[%s1494_s7 + $0x38] sm:$0xff] %v391_v47 }
  0xb7   : > { %v374_v51 = vsel %vm365_vm8, %v347_v49, %v320_v48 }
  0xb8   : > { %v392_v52 = vadd.f32 %v383_v50, %v374_v51 }
  0xba   : > { %401 = vst [vmem:[%s1494_s7 + $0x40] sm:$0xff] %v392_v52 }
  0xbb PF: > { %p402_p4 = scmp.ge.s32.totalorder %s1300_s19, 1  ;;  %p403_p8 = scmp.lt.s32.totalorder %s1300_s19, 2 }
  0xbd   : > { %p404_p0 = pnand %p403_p8, %p402_p4 }
  0xbe   : > { %v408_v53 = vld [vmem:[#allocation2] sm:$0xff] (!%p404_p0)  ;;  %v489_v54 = vld [vmem:[#allocation5] sm:$0xff] (!%p404_p0)  ;;  %v490_v58 = vld [vmem:[#allocation5 + $0x8] sm:$0xff] (!%p404_p0) }
  0xbf   : > { %407 = sbr.rel (%p404_p0) target bundleno = 223 (0xdf), region = 52  ;;  %v417_v55 = vshra.s32 (!%p404_p0), %v408_v53, 1  ;;  %v426_v56 = vand.u32 (!%p404_p0), 1, %v408_v53  ;;  %v409_v57 = vld [vmem:[#allocation2 + $0x8] sm:$0xff] (!%p404_p0)  ;;  %vm498_vm9 = vcmp.gt.f32.partialorder (!%p404_p0), %v489_v54, 0.5  ;;  %vm499_vm10 = vcmp.gt.f32.partialorder (!%p404_p0), %v490_v58, 0.5 }
  0xc0   : > { %v418_v59 = vshra.s32 (!%p404_p0), %v409_v57, 1  ;;  %v427_v60 = vand.u32 (!%p404_p0), 1, %v409_v57  ;;  %v410_v61 = vld [vmem:[#allocation2 + $0x10] sm:$0xff] (!%p404_p0)  ;;  %v491_v62 = vld [vmem:[#allocation5 + $0x10] sm:$0xff] (!%p404_p0)  ;;  %v492_v15 = vld [vmem:[#allocation5 + $0x18] sm:$0xff] (!%p404_p0) }
  0xc1   : > { %v435_v63 = vcvt.s32.f32 (!%p404_p0), %v426_v56  ;;  %v462_v0 = vcvt.s32.f32 (!%p404_p0), %v417_v55  ;;  %v419_v1 = vshra.s32 (!%p404_p0), %v410_v61, 1  ;;  %v428_v2 = vand.u32 (!%p404_p0), 1, %v410_v61  ;;  %v411_v3 = vld [vmem:[#allocation2 + $0x18] sm:$0xff] (!%p404_p0)  ;;  %v412_v26 = vld [vmem:[#allocation2 + $0x20] sm:$0xff] (!%p404_p0)  ;;  %v413_v31 = vld [vmem:[#allocation2 + $0x28] sm:$0xff] (!%p404_p0) }
  0xc2   : > { %v436_v4 = vcvt.s32.f32 (!%p404_p0), %v427_v60  ;;  %v463_v5 = vcvt.s32.f32 (!%p404_p0), %v418_v59  ;;  %vm500_vm11 = vcmp.gt.f32.partialorder (!%p404_p0), %v491_v62, 0.5  ;;  %v420_v6 = vshra.s32 (!%p404_p0), %v411_v3, 1  ;;  %v516_v18 = vld [vmem:[%s1483_s4] sm:$0xff] (!%p404_p0)  ;;  %v517_v23 = vld [vmem:[%s1483_s4 + $0x8] sm:$0xff] (!%p404_p0)  ;;  %v518_v30 = vld [vmem:[%s1483_s4 + $0x10] sm:$0xff] (!%p404_p0) }
  0xc3   : > { %v444_v7 = vadd.f32 (!%p404_p0), 0.5, %v435_v63  ;;  %v471_v8 = vadd.f32 (!%p404_p0), 0.5, %v462_v0  ;;  %v437_v9 = vcvt.s32.f32 (!%p404_p0), %v428_v2  ;;  %v464_v10 = vcvt.s32.f32 (!%p404_p0), %v419_v1  ;;  %v493_v36 = vld [vmem:[#allocation5 + $0x20] sm:$0xff] (!%p404_p0)  ;;  %v414_v41 = vld [vmem:[#allocation2 + $0x30] sm:$0xff] (!%p404_p0)  ;;  %v415_v54 = vld [vmem:[#allocation2 + $0x38] sm:$0xff] (!%p404_p0) }
  0xc4   : > { %v445_v11 = vadd.f32 (!%p404_p0), 0.5, %v436_v4  ;;  %v472_v12 = vadd.f32 (!%p404_p0), 0.5, %v463_v5  ;;  %v429_v13 = vand.u32 (!%p404_p0), 1, %v411_v3  ;;  %v465_v14 = vcvt.s32.f32 (!%p404_p0), %v420_v6  ;;  %v519_v44 = vld [vmem:[%s1483_s4 + $0x18] sm:$0xff] (!%p404_p0)  ;;  %v495_v62 = vld [vmem:[#allocation5 + $0x30] sm:$0xff] (!%p404_p0) }
  0xc5   : > { %v453_v16 = vmul.f32 (!%p404_p0), 16.0, %v444_v7  ;;  %v480_v17 = vmul.f32 (!%p404_p0), 16.0, %v471_v8  ;;  %v446_v19 = vadd.f32 (!%p404_p0), 0.5, %v437_v9  ;;  %v473_v20 = vadd.f32 (!%p404_p0), 0.5, %v464_v10  ;;  %v494_v49 = vld [vmem:[#allocation5 + $0x28] sm:$0xff] (!%p404_p0)  ;;  %v416_v8 = vld [vmem:[#allocation2 + $0x40] sm:$0xff] (!%p404_p0) }
  0xc6   : > { %v454_v21 = vmul.f32 16.0, %v445_v11  ;;  %v481_v22 = vmul.f32 16.0, %v472_v12  ;;  %v438_v24 = vcvt.s32.f32 %v429_v13  ;;  %v474_v25 = vadd.f32 0.5, %v465_v14  ;;  %v520_v1 = vld [vmem:[%s1483_s4 + $0x20] sm:$0xff]  ;;  %v521_v11 = vld [vmem:[%s1483_s4 + $0x28] sm:$0xff] }
  0xc7   : > { %v507_v27 = vsel %vm498_vm9, %v480_v17, %v453_v16  ;;  %v455_v28 = vmul.f32 16.0, %v446_v19  ;;  %v482_v29 = vmul.f32 16.0, %v473_v20  ;;  %vm501_vm12 = vcmp.gt.f32.partialorder %v492_v15, 0.5  ;;  %v496_v13 = vld [vmem:[#allocation5 + $0x38] sm:$0xff] }
  0xc8   : > { %v525_v32 = vadd.f32 %v516_v18, %v507_v27  ;;  %v508_v33 = vsel %vm499_vm10, %v481_v22, %v454_v21  ;;  %v447_v34 = vadd.f32 0.5, %v438_v24  ;;  %v483_v35 = vmul.f32 16.0, %v474_v25  ;;  %v522_v17 = vld [vmem:[%s1483_s4 + $0x30] sm:$0xff] }
  0xc9   : > { %v526_v37 = vadd.f32 %v517_v23, %v508_v33  ;;  %v509_v38 = vsel %vm500_vm11, %v482_v29, %v455_v28  ;;  %v421_v39 = vshra.s32 %v412_v26, 1  ;;  %v430_v40 = vand.u32 1, %v412_v26 }
  0xca   : > { %534 = vst [vmem:[%s1494_s7] sm:$0xff] %v525_v32  ;;  %v527_v42 = vadd.f32 %v518_v30, %v509_v38  ;;  %v456_v43 = vmul.f32 16.0, %v447_v34  ;;  %v422_v45 = vshra.s32 %v413_v31, 1  ;;  %vm502_vm13 = vcmp.gt.f32.partialorder %v493_v36, 0.5  ;;  %v497_v30 = vld [vmem:[#allocation5 + $0x40] sm:$0xff] }
  0xcb   : > { %535 = vst [vmem:[%s1494_s7 + $0x8] sm:$0xff] %v526_v37  ;;  %v439_v46 = vcvt.s32.f32 %v430_v40  ;;  %v466_v47 = vcvt.s32.f32 %v421_v39  ;;  %v431_v48 = vand.u32 1, %v413_v31  ;;  %v423_v52 = vshra.s32 %v414_v41, 1  ;;  %v523_v32 = vld [vmem:[%s1483_s4 + $0x38] sm:$0xff]  ;;  %v524_v39 = vld [vmem:[%s1483_s4 + $0x40] sm:$0xff] }
  0xcc   : > { %536 = vst [vmem:[%s1494_s7 + $0x10] sm:$0xff] %v527_v42  ;;  %v510_v50 = vsel %vm501_vm12, %v483_v35, %v456_v43  ;;  %v467_v51 = vcvt.s32.f32 %v422_v45  ;;  %v432_v53 = vand.u32 1, %v414_v41  ;;  %vm503_vm14 = vcmp.gt.f32.partialorder %v494_v49, 0.5 }
  0xcd   : > { %v528_v55 = vadd.f32 %v519_v44, %v510_v50  ;;  %v448_v56 = vadd.f32 0.5, %v439_v46  ;;  %v475_v57 = vadd.f32 0.5, %v466_v47  ;;  %v440_v58 = vcvt.s32.f32 %v431_v48 }
  0xce   : > { %v476_v59 = vadd.f32 0.5, %v467_v51  ;;  %v441_v60 = vcvt.s32.f32 %v432_v53  ;;  %v468_v61 = vcvt.s32.f32 %v423_v52  ;;  %v424_v3 = vshra.s32 %v415_v54, 1 }
  0xcf   : > { %537 = vst [vmem:[%s1494_s7 + $0x18] sm:$0xff] %v528_v55  ;;  %v457_v63 = vmul.f32 16.0, %v448_v56  ;;  %v484_v0 = vmul.f32 16.0, %v475_v57  ;;  %v449_v2 = vadd.f32 0.5, %v440_v58  ;;  %v433_v7 = vand.u32 1, %v415_v54 }
  0xd0   : > { %v485_v4 = vmul.f32 16.0, %v476_v59  ;;  %v450_v5 = vadd.f32 0.5, %v441_v60  ;;  %v477_v6 = vadd.f32 0.5, %v468_v61  ;;  %vm504_vm15 = vcmp.gt.f32.partialorder %v495_v62, 0.5 }
  0xd1   : > { %v511_v9 = vsel %vm502_vm13, %v484_v0, %v457_v63  ;;  %v458_v10 = vmul.f32 16.0, %v449_v2  ;;  %v469_v12 = vcvt.s32.f32 %v424_v3  ;;  %v442_v18 = vcvt.s32.f32 %v433_v7 }
  0xd2   : > { %v529_v14 = vadd.f32 %v520_v1, %v511_v9  ;;  %v459_v15 = vmul.f32 16.0, %v450_v5  ;;  %v486_v16 = vmul.f32 16.0, %v477_v6  ;;  %v425_v21 = vshra.s32 %v416_v8, 1 }
  0xd3   : > { %v512_v19 = vsel %vm503_vm14, %v485_v4, %v458_v10  ;;  %v478_v20 = vadd.f32 0.5, %v469_v12  ;;  %v434_v22 = vand.u32 1, %v416_v8  ;;  %v451_v25 = vadd.f32 0.5, %v442_v18 }
  0xd4   : > { %538 = vst [vmem:[%s1494_s7 + $0x20] sm:$0xff] %v529_v14  ;;  %v530_v23 = vadd.f32 %v521_v11, %v512_v19  ;;  %v513_v24 = vsel %vm504_vm15, %v486_v16, %v459_v15  ;;  %vm505_vm0 = vcmp.gt.f32.partialorder %v496_v13, 0.5  ;;  %v470_v29 = vcvt.s32.f32 %v425_v21 }
  0xd5   : > { %v531_v26 = vadd.f32 %v522_v17, %v513_v24  ;;  %v487_v27 = vmul.f32 16.0, %v478_v20  ;;  %v443_v28 = vcvt.s32.f32 %v434_v22  ;;  %v460_v31 = vmul.f32 16.0, %v451_v25 }
  0xd6   : > { %539 = vst [vmem:[%s1494_s7 + $0x28] sm:$0xff] %v530_v23  ;;  %v479_v34 = vadd.f32 0.5, %v470_v29  ;;  %vm506_vm1 = vcmp.gt.f32.partialorder %v497_v30, 0.5 }
  0xd7   : > { %540 = vst [vmem:[%s1494_s7 + $0x30] sm:$0xff] %v531_v26  ;;  %v452_v33 = vadd.f32 0.5, %v443_v28  ;;  %v514_v35 = vsel %vm505_vm0, %v487_v27, %v460_v31 }
  0xd8   : > { %v532_v36 = vadd.f32 %v523_v32, %v514_v35  ;;  %v488_v38 = vmul.f32 16.0, %v479_v34 }
  0xd9   : > { %v461_v37 = vmul.f32 16.0, %v452_v33 }
  0xda   : > { %541 = vst [vmem:[%s1494_s7 + $0x38] sm:$0xff] %v532_v36 }
  0xdb   : > { %v515_v40 = vsel %vm506_vm1, %v488_v38, %v461_v37 }
  0xdc   : > { %v533_v41 = vadd.f32 %v524_v39, %v515_v40 }
  0xde   : > { %542 = vst [vmem:[%s1494_s7 + $0x40] sm:$0xff] %v533_v41 }
  0xdf PF: > { %p543_p3 = scmp.ge.s32.totalorder %s1300_s19, 2  ;;  %p544_p12 = scmp.lt.s32.totalorder %s1300_s19, 3 }
  0xe1   : > { %p545_p5 = pnand %p544_p12, %p543_p3 }
  0xe2   : > { %v549_v42 = vld [vmem:[#allocation2] sm:$0xff] (!%p545_p5)  ;;  %v585_v43 = vld [vmem:[#allocation5] sm:$0xff] (!%p545_p5)  ;;  %v586_v46 = vld [vmem:[#allocation5 + $0x8] sm:$0xff] (!%p545_p5) }
  0xe3   : > { %548 = sbr.rel (%p545_p5) target bundleno = 247 (0xf7), region = 56  ;;  %v558_v44 = vcvt.s32.f32 (!%p545_p5), %v549_v42  ;;  %v550_v45 = vld [vmem:[#allocation2 + $0x8] sm:$0xff] (!%p545_p5)  ;;  %v551_v48 = vld [vmem:[#allocation2 + $0x10] sm:$0xff] (!%p545_p5)  ;;  %v587_v49 = vld [vmem:[#allocation5 + $0x10] sm:$0xff] (!%p545_p5)  ;;  %vm594_vm2 = vcmp.gt.f32.partialorder (!%p545_p5), %v585_v43, 0.5  ;;  %vm595_vm3 = vcmp.gt.f32.partialorder (!%p545_p5), %v586_v46, 0.5 }
  0xe4   : > { %v559_v47 = vcvt.s32.f32 (!%p545_p5), %v550_v45  ;;  %v560_v51 = vcvt.s32.f32 (!%p545_p5), %v551_v48  ;;  %v552_v52 = vld [vmem:[#allocation2 + $0x18] sm:$0xff] (!%p545_p5)  ;;  %v588_v53 = vld [vmem:[#allocation5 + $0x18] sm:$0xff] (!%p545_p5)  ;;  %vm596_vm4 = vcmp.gt.f32.partialorder (!%p545_p5), %v587_v49, 0.5  ;;  %v589_v57 = vld [vmem:[#allocation5 + $0x20] sm:$0xff] (!%p545_p5) }
  0xe5   : > { %v567_v50 = vadd.f32 (!%p545_p5), 0.5, %v558_v44  ;;  %v561_v55 = vcvt.s32.f32 (!%p545_p5), %v552_v52  ;;  %vm597_vm5 = vcmp.gt.f32.partialorder (!%p545_p5), %v588_v53, 0.5  ;;  %v553_v56 = vld [vmem:[#allocation2 + $0x20] sm:$0xff] (!%p545_p5)  ;;  %v612_v59 = vld [vmem:[%s1483_s4] sm:$0xff] (!%p545_p5)  ;;  %vm598_vm6 = vcmp.gt.f32.partialorder (!%p545_p5), %v589_v57, 0.5  ;;  %v554_v62 = vld [vmem:[#allocation2 + $0x28] sm:$0xff] (!%p545_p5) }
  0xe6   : > { %v568_v54 = vadd.f32 (!%p545_p5), 0.5, %v559_v47  ;;  %v569_v60 = vadd.f32 (!%p545_p5), 0.5, %v560_v51  ;;  %v562_v61 = vcvt.s32.f32 (!%p545_p5), %v553_v56  ;;  %v590_v63 = vld [vmem:[#allocation5 + $0x28] sm:$0xff] (!%p545_p5)  ;;  %v613_v1 = vld [vmem:[%s1483_s4 + $0x8] sm:$0xff] (!%p545_p5)  ;;  %v563_v3 = vcvt.s32.f32 (!%p545_p5), %v554_v62  ;;  %v614_v7 = vld [vmem:[%s1483_s4 + $0x10] sm:$0xff] (!%p545_p5) }
  0xe7   : > { %v576_v58 = vmul.f32 (!%p545_p5), 32.0, %v567_v50  ;;  %v570_v2 = vadd.f32 (!%p545_p5), 0.5, %v561_v55  ;;  %vm599_vm7 = vcmp.gt.f32.partialorder (!%p545_p5), %v590_v63, 0.5  ;;  %v555_v4 = vld [vmem:[#allocation2 + $0x30] sm:$0xff] (!%p545_p5)  ;;  %v591_v10 = vld [vmem:[#allocation5 + $0x30] sm:$0xff] (!%p545_p5)  ;;  %v557_v22 = vld [vmem:[#allocation2 + $0x40] sm:$0xff] (!%p545_p5) }
  0xe8   : > { %v577_v0 = vmul.f32 (!%p545_p5), 32.0, %v568_v54  ;;  %v578_v6 = vmul.f32 (!%p545_p5), 32.0, %v569_v60  ;;  %v571_v8 = vadd.f32 (!%p545_p5), 0.5, %v562_v61  ;;  %v564_v9 = vcvt.s32.f32 (!%p545_p5), %v555_v4  ;;  %v615_v14 = vld [vmem:[%s1483_s4 + $0x18] sm:$0xff] (!%p545_p5)  ;;  %v556_v16 = vld [vmem:[#allocation2 + $0x38] sm:$0xff] (!%p545_p5)  ;;  %v618_v30 = vld [vmem:[%s1483_s4 + $0x30] sm:$0xff] (!%p545_p5) }
  0xe9   : > { %v603_v5 = vsel (!%p545_p5), %vm594_vm2, %v576_v58, 16.0  ;;  %v579_v13 = vmul.f32 (!%p545_p5), 32.0, %v570_v2  ;;  %v572_v15 = vadd.f32 (!%p545_p5), 0.5, %v563_v3  ;;  %v616_v20 = vld [vmem:[%s1483_s4 + $0x20] sm:$0xff] (!%p545_p5)  ;;  %v617_v26 = vld [vmem:[%s1483_s4 + $0x28] sm:$0xff] (!%p545_p5)  ;;  %vm600_vm8 = vcmp.gt.f32.partialorder (!%p545_p5), %v591_v10, 0.5 }
  0xea   : > { %v621_v11 = vadd.f32 %v612_v59, %v603_v5  ;;  %v604_v12 = vsel %vm595_vm3, %v577_v0, 16.0  ;;  %v605_v18 = vsel %vm596_vm4, %v578_v6, 16.0  ;;  %v580_v19 = vmul.f32 32.0, %v571_v8  ;;  %v592_v32 = vld [vmem:[#allocation5 + $0x38] sm:$0xff]  ;;  %v593_v36 = vld [vmem:[#allocation5 + $0x40] sm:$0xff]  ;;  %v620_v45 = vld [vmem:[%s1483_s4 + $0x40] sm:$0xff] }
  0xeb   : > { %v622_v17 = vadd.f32 %v613_v1, %v604_v12  ;;  %v573_v21 = vadd.f32 0.5, %v564_v9  ;;  %v623_v23 = vadd.f32 %v614_v7, %v605_v18  ;;  %v606_v24 = vsel %vm597_vm5, %v579_v13, 16.0  ;;  %v619_v43 = vld [vmem:[%s1483_s4 + $0x38] sm:$0xff] }
  0xec   : > { %630 = vst [vmem:[%s1494_s7] sm:$0xff] %v621_v11  ;;  %v581_v25 = vmul.f32 32.0, %v572_v15  ;;  %v624_v27 = vadd.f32 %v615_v14, %v606_v24  ;;  %v607_v28 = vsel %vm598_vm6, %v580_v19, 16.0  ;;  %v565_v31 = vcvt.s32.f32 %v556_v16 }
  0xed   : > { %631 = vst [vmem:[%s1494_s7 + $0x8] sm:$0xff] %v622_v17  ;;  %v582_v29 = vmul.f32 32.0, %v573_v21  ;;  %632 = vst [vmem:[%s1494_s7 + $0x10] sm:$0xff] %v623_v23  ;;  %v625_v33 = vadd.f32 %v616_v20, %v607_v28  ;;  %v566_v35 = vcvt.s32.f32 %v557_v22  ;;  %vm601_vm9 = vcmp.gt.f32.partialorder %v592_v32, 0.5 }
  0xee   : > { %v608_v34 = vsel %vm599_vm7, %v581_v25, 16.0  ;;  %633 = vst [vmem:[%s1494_s7 + $0x18] sm:$0xff] %v624_v27  ;;  %v574_v39 = vadd.f32 0.5, %v565_v31  ;;  %vm602_vm10 = vcmp.gt.f32.partialorder %v593_v36, 0.5 }
  0xef   : > { %v626_v37 = vadd.f32 %v617_v26, %v608_v34  ;;  %v609_v38 = vsel %vm600_vm8, %v582_v29, 16.0  ;;  %634 = vst [vmem:[%s1494_s7 + $0x20] sm:$0xff] %v625_v33  ;;  %v575_v41 = vadd.f32 0.5, %v566_v35 }
  0xf0   : > { %v627_v40 = vadd.f32 %v618_v30, %v609_v38  ;;  %v583_v42 = vmul.f32 32.0, %v574_v39 }
  0xf1   : > { %635 = vst [vmem:[%s1494_s7 + $0x28] sm:$0xff] %v626_v37  ;;  %v584_v44 = vmul.f32 32.0, %v575_v41 }
  0xf2   : > { %636 = vst [vmem:[%s1494_s7 + $0x30] sm:$0xff] %v627_v40  ;;  %v610_v46 = vsel %vm601_vm9, %v583_v42, 16.0 }
  0xf3   : > { %v628_v47 = vadd.f32 %v619_v43, %v610_v46  ;;  %v611_v48 = vsel %vm602_vm10, %v584_v44, 16.0 }
  0xf4   : > { %v629_v49 = vadd.f32 %v620_v45, %v611_v48 }
  0xf5   : > { %637 = vst [vmem:[%s1494_s7 + $0x38] sm:$0xff] %v628_v47 }
  0xf6   : > { %638 = vst [vmem:[%s1494_s7 + $0x40] sm:$0xff] %v629_v49 }
  0xf7 PF: > { %p639_p7 = scmp.ge.s32.totalorder %s1300_s19, 3  ;;  %p640_p13 = scmp.lt.s32.totalorder %s1300_s19, 4 }
  0xf9   : > { %p641_p1 = pnand %p640_p13, %p639_p7 }
  0xfa   : > { %v645_v50 = vld [vmem:[#allocation2] sm:$0xff] (!%p641_p1)  ;;  %v681_v51 = vld [vmem:[#allocation5] sm:$0xff] (!%p641_p1)  ;;  %v682_v54 = vld [vmem:[#allocation5 + $0x8] sm:$0xff] (!%p641_p1) }
  0xfb   : > { %644 = sbr.rel (%p641_p1) target bundleno = 271 (0x10f), region = 60  ;;  %v654_v52 = vcvt.s32.f32 (!%p641_p1), %v645_v50  ;;  %v646_v53 = vld [vmem:[#allocation2 + $0x8] sm:$0xff] (!%p641_p1)  ;;  %v647_v56 = vld [vmem:[#allocation2 + $0x10] sm:$0xff] (!%p641_p1)  ;;  %v683_v57 = vld [vmem:[#allocation5 + $0x10] sm:$0xff] (!%p641_p1)  ;;  %vm690_vm11 = vcmp.gt.f32.partialorder (!%p641_p1), %v681_v51, 0.5  ;;  %vm691_vm12 = vcmp.gt.f32.partialorder (!%p641_p1), %v682_v54, 0.5 }
  0xfc   : > { %v655_v55 = vcvt.s32.f32 (!%p641_p1), %v646_v53  ;;  %v656_v59 = vcvt.s32.f32 (!%p641_p1), %v647_v56  ;;  %v648_v60 = vld [vmem:[#allocation2 + $0x18] sm:$0xff] (!%p641_p1)  ;;  %v684_v61 = vld [vmem:[#allocation5 + $0x18] sm:$0xff] (!%p641_p1)  ;;  %vm692_vm13 = vcmp.gt.f32.partialorder (!%p641_p1), %v683_v57, 0.5  ;;  %v685_v1 = vld [vmem:[#allocation5 + $0x20] sm:$0xff] (!%p641_p1) }
  0xfd   : > { %v663_v58 = vadd.f32 (!%p641_p1), 0.5, %v654_v52  ;;  %v657_v63 = vcvt.s32.f32 (!%p641_p1), %v648_v60  ;;  %vm693_vm14 = vcmp.gt.f32.partialorder (!%p641_p1), %v684_v61, 0.5  ;;  %v649_v0 = vld [vmem:[#allocation2 + $0x20] sm:$0xff] (!%p641_p1)  ;;  %v708_v3 = vld [vmem:[%s1483_s4] sm:$0xff] (!%p641_p1)  ;;  %vm694_vm15 = vcmp.gt.f32.partialorder (!%p641_p1), %v685_v1, 0.5  ;;  %v650_v6 = vld [vmem:[#allocation2 + $0x28] sm:$0xff] (!%p641_p1) }
  0xfe   : > { %v664_v62 = vadd.f32 (!%p641_p1), 0.5, %v655_v55  ;;  %v665_v4 = vadd.f32 (!%p641_p1), 0.5, %v656_v59  ;;  %v658_v5 = vcvt.s32.f32 (!%p641_p1), %v649_v0  ;;  %v686_v7 = vld [vmem:[#allocation5 + $0x28] sm:$0xff] (!%p641_p1)  ;;  %v709_v9 = vld [vmem:[%s1483_s4 + $0x8] sm:$0xff] (!%p641_p1)  ;;  %v659_v11 = vcvt.s32.f32 (!%p641_p1), %v650_v6  ;;  %v710_v15 = vld [vmem:[%s1483_s4 + $0x10] sm:$0xff] (!%p641_p1) }
  0xff   : > { %v672_v2 = vmul.f32 (!%p641_p1), 64.0, %v663_v58  ;;  %v666_v10 = vadd.f32 (!%p641_p1), 0.5, %v657_v63  ;;  %vm695_vm0 = vcmp.gt.f32.partialorder (!%p641_p1), %v686_v7, 0.5  ;;  %v651_v12 = vld [vmem:[#allocation2 + $0x30] sm:$0xff] (!%p641_p1)  ;;  %v687_v18 = vld [vmem:[#allocation5 + $0x30] sm:$0xff] (!%p641_p1)  ;;  %v653_v30 = vld [vmem:[#allocation2 + $0x40] sm:$0xff] (!%p641_p1) }
 0x100   : > { %v673_v8 = vmul.f32 (!%p641_p1), 64.0, %v664_v62  ;;  %v674_v14 = vmul.f32 (!%p641_p1), 64.0, %v665_v4  ;;  %v667_v16 = vadd.f32 (!%p641_p1), 0.5, %v658_v5  ;;  %v660_v17 = vcvt.s32.f32 (!%p641_p1), %v651_v12  ;;  %v711_v22 = vld [vmem:[%s1483_s4 + $0x18] sm:$0xff] (!%p641_p1)  ;;  %v652_v24 = vld [vmem:[#allocation2 + $0x38] sm:$0xff] (!%p641_p1)  ;;  %v714_v38 = vld [vmem:[%s1483_s4 + $0x30] sm:$0xff] (!%p641_p1) }
 0x101   : > { %v699_v13 = vsel (!%p641_p1), %vm690_vm11, %v672_v2, 32.0  ;;  %v675_v21 = vmul.f32 (!%p641_p1), 64.0, %v666_v10  ;;  %v668_v23 = vadd.f32 (!%p641_p1), 0.5, %v659_v11  ;;  %v712_v28 = vld [vmem:[%s1483_s4 + $0x20] sm:$0xff] (!%p641_p1)  ;;  %v713_v34 = vld [vmem:[%s1483_s4 + $0x28] sm:$0xff] (!%p641_p1)  ;;  %vm696_vm1 = vcmp.gt.f32.partialorder (!%p641_p1), %v687_v18, 0.5 }
 0x102   : > { %v717_v19 = vadd.f32 %v708_v3, %v699_v13  ;;  %v700_v20 = vsel %vm691_vm12, %v673_v8, 32.0  ;;  %v701_v26 = vsel %vm692_vm13, %v674_v14, 32.0  ;;  %v676_v27 = vmul.f32 64.0, %v667_v16  ;;  %v688_v40 = vld [vmem:[#allocation5 + $0x38] sm:$0xff]  ;;  %v689_v44 = vld [vmem:[#allocation5 + $0x40] sm:$0xff]  ;;  %v716_v53 = vld [vmem:[%s1483_s4 + $0x40] sm:$0xff] }
 0x103   : > { %v718_v25 = vadd.f32 %v709_v9, %v700_v20  ;;  %v669_v29 = vadd.f32 0.5, %v660_v17  ;;  %v719_v31 = vadd.f32 %v710_v15, %v701_v26  ;;  %v702_v32 = vsel %vm693_vm14, %v675_v21, 32.0  ;;  %v715_v51 = vld [vmem:[%s1483_s4 + $0x38] sm:$0xff] }
 0x104   : > { %726 = vst [vmem:[%s1494_s7] sm:$0xff] %v717_v19  ;;  %v677_v33 = vmul.f32 64.0, %v668_v23  ;;  %v720_v35 = vadd.f32 %v711_v22, %v702_v32  ;;  %v703_v36 = vsel %vm694_vm15, %v676_v27, 32.0  ;;  %v661_v39 = vcvt.s32.f32 %v652_v24 }
 0x105   : > { %727 = vst [vmem:[%s1494_s7 + $0x8] sm:$0xff] %v718_v25  ;;  %v678_v37 = vmul.f32 64.0, %v669_v29  ;;  %728 = vst [vmem:[%s1494_s7 + $0x10] sm:$0xff] %v719_v31  ;;  %v721_v41 = vadd.f32 %v712_v28, %v703_v36  ;;  %v662_v43 = vcvt.s32.f32 %v653_v30  ;;  %vm697_vm2 = vcmp.gt.f32.partialorder %v688_v40, 0.5 }
 0x106   : > { %v704_v42 = vsel %vm695_vm0, %v677_v33, 32.0  ;;  %729 = vst [vmem:[%s1494_s7 + $0x18] sm:$0xff] %v720_v35  ;;  %v670_v47 = vadd.f32 0.5, %v661_v39  ;;  %vm698_vm3 = vcmp.gt.f32.partialorder %v689_v44, 0.5 }
 0x107   : > { %v722_v45 = vadd.f32 %v713_v34, %v704_v42  ;;  %v705_v46 = vsel %vm696_vm1, %v678_v37, 32.0  ;;  %730 = vst [vmem:[%s1494_s7 + $0x20] sm:$0xff] %v721_v41  ;;  %v671_v49 = vadd.f32 0.5, %v662_v43 }
 0x108   : > { %v723_v48 = vadd.f32 %v714_v38, %v705_v46  ;;  %v679_v50 = vmul.f32 64.0, %v670_v47 }
 0x109   : > { %731 = vst [vmem:[%s1494_s7 + $0x28] sm:$0xff] %v722_v45  ;;  %v680_v52 = vmul.f32 64.0, %v671_v49 }
 0x10a   : > { %732 = vst [vmem:[%s1494_s7 + $0x30] sm:$0xff] %v723_v48  ;;  %v706_v54 = vsel %vm697_vm2, %v679_v50, 32.0 }
 0x10b   : > { %v724_v55 = vadd.f32 %v715_v51, %v706_v54  ;;  %v707_v56 = vsel %vm698_vm3, %v680_v52, 32.0 }
 0x10c   : > { %v725_v57 = vadd.f32 %v716_v53, %v707_v56 }
 0x10d   : > { %733 = vst [vmem:[%s1494_s7 + $0x38] sm:$0xff] %v724_v55 }
 0x10e   : > { %734 = vst [vmem:[%s1494_s7 + $0x40] sm:$0xff] %v725_v57 }
 0x10f PF: > { %p735_p11 = scmp.ge.s32.totalorder %s1300_s19, 4  ;;  %p736_p6 = scmp.lt.s32.totalorder %s1300_s19, 5 }
 0x111   : > { %p737_p2 = pnand %p736_p6, %p735_p11 }
 0x112   : > { %v741_v58 = vld [vmem:[#allocation2] sm:$0xff] (!%p737_p2)  ;;  %v777_v59 = vld [vmem:[#allocation5] sm:$0xff] (!%p737_p2)  ;;  %v778_v62 = vld [vmem:[#allocation5 + $0x8] sm:$0xff] (!%p737_p2) }
 0x113   : > { %740 = sbr.rel (%p737_p2) target bundleno = 295 (0x127), region = 64  ;;  %v750_v60 = vcvt.s32.f32 (!%p737_p2), %v741_v58  ;;  %v742_v61 = vld [vmem:[#allocation2 + $0x8] sm:$0xff] (!%p737_p2)  ;;  %v743_v0 = vld [vmem:[#allocation2 + $0x10] sm:$0xff] (!%p737_p2)  ;;  %v779_v1 = vld [vmem:[#allocation5 + $0x10] sm:$0xff] (!%p737_p2)  ;;  %vm786_vm4 = vcmp.gt.f32.partialorder (!%p737_p2), %v777_v59, 0.5  ;;  %vm787_vm5 = vcmp.gt.f32.partialorder (!%p737_p2), %v778_v62, 0.5 }
 0x114   : > { %v751_v63 = vcvt.s32.f32 (!%p737_p2), %v742_v61  ;;  %v752_v3 = vcvt.s32.f32 (!%p737_p2), %v743_v0  ;;  %v744_v4 = vld [vmem:[#allocation2 + $0x18] sm:$0xff] (!%p737_p2)  ;;  %v780_v5 = vld [vmem:[#allocation5 + $0x18] sm:$0xff] (!%p737_p2)  ;;  %vm788_vm6 = vcmp.gt.f32.partialorder (!%p737_p2), %v779_v1, 0.5  ;;  %v781_v9 = vld [vmem:[#allocation5 + $0x20] sm:$0xff] (!%p737_p2) }
 0x115   : > { %v759_v2 = vadd.f32 (!%p737_p2), 0.5, %v750_v60  ;;  %v753_v7 = vcvt.s32.f32 (!%p737_p2), %v744_v4  ;;  %vm789_vm7 = vcmp.gt.f32.partialorder (!%p737_p2), %v780_v5, 0.5  ;;  %v745_v8 = vld [vmem:[#allocation2 + $0x20] sm:$0xff] (!%p737_p2)  ;;  %v804_v11 = vld [vmem:[%s1483_s4] sm:$0xff] (!%p737_p2)  ;;  %vm790_vm8 = vcmp.gt.f32.partialorder (!%p737_p2), %v781_v9, 0.5  ;;  %v746_v14 = vld [vmem:[#allocation2 + $0x28] sm:$0xff] (!%p737_p2) }
 0x116   : > { %v760_v6 = vadd.f32 (!%p737_p2), 0.5, %v751_v63  ;;  %v761_v12 = vadd.f32 (!%p737_p2), 0.5, %v752_v3  ;;  %v754_v13 = vcvt.s32.f32 (!%p737_p2), %v745_v8  ;;  %v782_v15 = vld [vmem:[#allocation5 + $0x28] sm:$0xff] (!%p737_p2)  ;;  %v805_v17 = vld [vmem:[%s1483_s4 + $0x8] sm:$0xff] (!%p737_p2)  ;;  %v755_v19 = vcvt.s32.f32 (!%p737_p2), %v746_v14  ;;  %v806_v23 = vld [vmem:[%s1483_s4 + $0x10] sm:$0xff] (!%p737_p2) }
 0x117   : > { %v768_v10 = vmul.f32 (!%p737_p2), 128.0, %v759_v2  ;;  %v762_v18 = vadd.f32 (!%p737_p2), 0.5, %v753_v7  ;;  %vm791_vm9 = vcmp.gt.f32.partialorder (!%p737_p2), %v782_v15, 0.5  ;;  %v747_v20 = vld [vmem:[#allocation2 + $0x30] sm:$0xff] (!%p737_p2)  ;;  %v783_v26 = vld [vmem:[#allocation5 + $0x30] sm:$0xff] (!%p737_p2)  ;;  %v749_v38 = vld [vmem:[#allocation2 + $0x40] sm:$0xff] (!%p737_p2) }
 0x118   : > { %v769_v16 = vmul.f32 (!%p737_p2), 128.0, %v760_v6  ;;  %v770_v22 = vmul.f32 (!%p737_p2), 128.0, %v761_v12  ;;  %v763_v24 = vadd.f32 (!%p737_p2), 0.5, %v754_v13  ;;  %v756_v25 = vcvt.s32.f32 (!%p737_p2), %v747_v20  ;;  %v807_v30 = vld [vmem:[%s1483_s4 + $0x18] sm:$0xff] (!%p737_p2)  ;;  %v748_v32 = vld [vmem:[#allocation2 + $0x38] sm:$0xff] (!%p737_p2)  ;;  %v810_v46 = vld [vmem:[%s1483_s4 + $0x30] sm:$0xff] (!%p737_p2) }
 0x119   : > { %v795_v21 = vsel (!%p737_p2), %vm786_vm4, %v768_v10, 64.0  ;;  %v771_v29 = vmul.f32 (!%p737_p2), 128.0, %v762_v18  ;;  %v764_v31 = vadd.f32 (!%p737_p2), 0.5, %v755_v19  ;;  %v808_v36 = vld [vmem:[%s1483_s4 + $0x20] sm:$0xff] (!%p737_p2)  ;;  %v809_v42 = vld [vmem:[%s1483_s4 + $0x28] sm:$0xff] (!%p737_p2)  ;;  %vm792_vm10 = vcmp.gt.f32.partialorder (!%p737_p2), %v783_v26, 0.5 }
 0x11a   : > { %v813_v27 = vadd.f32 %v804_v11, %v795_v21  ;;  %v796_v28 = vsel %vm787_vm5, %v769_v16, 64.0  ;;  %v797_v34 = vsel %vm788_vm6, %v770_v22, 64.0  ;;  %v772_v35 = vmul.f32 128.0, %v763_v24  ;;  %v784_v48 = vld [vmem:[#allocation5 + $0x38] sm:$0xff]  ;;  %v785_v52 = vld [vmem:[#allocation5 + $0x40] sm:$0xff]  ;;  %v812_v61 = vld [vmem:[%s1483_s4 + $0x40] sm:$0xff] }
 0x11b   : > { %v814_v33 = vadd.f32 %v805_v17, %v796_v28  ;;  %v765_v37 = vadd.f32 0.5, %v756_v25  ;;  %v815_v39 = vadd.f32 %v806_v23, %v797_v34  ;;  %v798_v40 = vsel %vm789_vm7, %v771_v29, 64.0  ;;  %v811_v59 = vld [vmem:[%s1483_s4 + $0x38] sm:$0xff] }
 0x11c   : > { %822 = vst [vmem:[%s1494_s7] sm:$0xff] %v813_v27  ;;  %v773_v41 = vmul.f32 128.0, %v764_v31  ;;  %v816_v43 = vadd.f32 %v807_v30, %v798_v40  ;;  %v799_v44 = vsel %vm790_vm8, %v772_v35, 64.0  ;;  %v757_v47 = vcvt.s32.f32 %v748_v32 }
 0x11d   : > { %823 = vst [vmem:[%s1494_s7 + $0x8] sm:$0xff] %v814_v33  ;;  %v774_v45 = vmul.f32 128.0, %v765_v37  ;;  %824 = vst [vmem:[%s1494_s7 + $0x10] sm:$0xff] %v815_v39  ;;  %v817_v49 = vadd.f32 %v808_v36, %v799_v44  ;;  %v758_v51 = vcvt.s32.f32 %v749_v38  ;;  %vm793_vm11 = vcmp.gt.f32.partialorder %v784_v48, 0.5 }
 0x11e   : > { %v800_v50 = vsel %vm791_vm9, %v773_v41, 64.0  ;;  %825 = vst [vmem:[%s1494_s7 + $0x18] sm:$0xff] %v816_v43  ;;  %v766_v55 = vadd.f32 0.5, %v757_v47  ;;  %vm794_vm12 = vcmp.gt.f32.partialorder %v785_v52, 0.5 }
 0x11f   : > { %v818_v53 = vadd.f32 %v809_v42, %v800_v50  ;;  %v801_v54 = vsel %vm792_vm10, %v774_v45, 64.0  ;;  %826 = vst [vmem:[%s1494_s7 + $0x20] sm:$0xff] %v817_v49  ;;  %v767_v57 = vadd.f32 0.5, %v758_v51 }
 0x120   : > { %v819_v56 = vadd.f32 %v810_v46, %v801_v54  ;;  %v775_v58 = vmul.f32 128.0, %v766_v55 }
 0x121   : > { %827 = vst [vmem:[%s1494_s7 + $0x28] sm:$0xff] %v818_v53  ;;  %v776_v60 = vmul.f32 128.0, %v767_v57 }
 0x122   : > { %828 = vst [vmem:[%s1494_s7 + $0x30] sm:$0xff] %v819_v56  ;;  %v802_v62 = vsel %vm793_vm11, %v775_v58, 64.0 }
 0x123   : > { %v820_v63 = vadd.f32 %v811_v59, %v802_v62  ;;  %v803_v0 = vsel %vm794_vm12, %v776_v60, 64.0 }
 0x124   : > { %v821_v1 = vadd.f32 %v812_v61, %v803_v0 }
 0x125   : > { %829 = vst [vmem:[%s1494_s7 + $0x38] sm:$0xff] %v820_v63 }
 0x126   : > { %830 = vst [vmem:[%s1494_s7 + $0x40] sm:$0xff] %v821_v1 }
 0x127 PF: > { %s952_s26 = smul.u32 1152, %s1300_s19  ;;  %s845_s0 = sshll.u32 %s1494_s7, 4  ;;  %s1631_s0 = int_to_ptr.vmem [resolvable:$true] %s845_s0 }
 0x128   : > { %s1635_s9 = scalar_lea.sflag [#allocation4], %s246_s25  ;;  %s1138_s23 = scalar_lea.vmem %s1631_s0, 1152 }
 0x129   : > { %s1629_s29 = scalar_lea.hbm %s1689_s3, %s952_s26  ;;  %p1139_p10 = scmp.ne.s32.totalorder %s1631_s0, %s1138_s23 }
 0x12a   : > { %p1726_p4 = scmp.ne.s32.totalorder %s1707_s28, 0  ;;  %s1243_s19 = smov [#allocation8]  }
 0x12b   : > { %s1142_s14 = sshll.u32 %s1243_s19, 4  ;;  %s1143_s14 = int_to_ptr.vmem [resolvable:$false] %s1142_s14 }
 0x12c   : > { %p1140_p8 = pnand %p1139_p10, %p1726_p4  ;;  %s1144_s8 = scalar_lea.vmem %s1143_s14, 2304 }
 0x12d   : > { %p1145_p3 = scmp.lt.s32.totalorder %s1631_s0, %s1143_s14  ;;  %p1146_p12 = scmp.lt.s32.totalorder %s1144_s8, %s1138_s23 }
 0x12e   : > { %p1141_p0 = pneg %p1140_p8 }
 0x12f   : > { %p1147_p5 = por %p1146_p12, %p1145_p3 }
 0x131   : > { %p1148_p7 = pnand %p1147_p5, %p1141_p0 }
 0x133   : > { %1151 = shalt.err (!%p1148_p7)
}
 0x134   : > { %s1152_s10 = scalar_lea.hbm %s1629_s29, 1152  ;;  %s1156_s22 = scalar_lea.hbm %s1689_s3, 5760 }
 0x135   : > { %p1153_p13 = scmp.ne.s32.totalorder %s1629_s29, %s1152_s10  ;;  %p1157_p6 = scmp.lt.u32.totalorder %s1629_s29, %s1689_s3 }
 0x136   : > { %p1158_p2 = scmp.lt.u32.totalorder %s1156_s22, %s1152_s10  ;;  %p1160_p8 = scmp.lt.u32.totalorder %s1152_s10, %s1629_s29 }
 0x137   : > { %p1154_p1 = pnand %p1153_p13, %p1726_p4 }
 0x138   : > { %p1159_p10 = por %p1158_p2, %p1157_p6 }
 0x139   : > { %p1155_p11 = pneg %p1154_p1 }
 0x13a   : > { %p1161_p0 = por %p1160_p8, %p1159_p10 }
 0x13c   : > { %p1162_p3 = pnand %p1161_p0, %p1155_p11 }
 0x13e   : > { %1165 = shalt.err (!%p1162_p3)
}
 0x13f   : > { %s1244_s24 = smov 128   ;;  %s1245_s30 = smov 8  }
 0x140   : > { %967 = dma.vmem_to_hbm [thread:$0]  (%p1726_p4), %s1631_s0, 1152, %s1629_s29, %s1635_s9, %s1244_s24, %s1244_s24, %s1245_s30  }
 0x141 PF: > { %s1727_s4 = sld [smem:[#allocation13_spill]]  ;;  %s1728_s25 = sld [smem:[#allocation16_spill]] }
 0x147   : > { %s860_s5 = sand.u32 1, %s1727_s4   ;;  %p1729_p12 = scmp.ne.s32.totalorder %s1728_s25, 0 }
 0x148   : > { %s861_s7 = scalar_lea.sflag [#allocation4], %s860_s5 }
 0x149   : > { %p981_p5 = pnand %p1729_p12, %p66_p9 }
 0x14b   : > { %1207 = dma.done.wait (!%p981_p5), %s861_s7, 1152  }
 0x14c   : > { %1209 = vsyncadd (!%p981_p5), %s861_s7, 4294966144  ;;  %s1730_s26 = sld [smem:[#allocation14_spill]]  ;;  %s1731_s14 = sld [smem:[#allocation15_spill]] }
 0x14d   : > { %p15_p4 = scmp.ge.s32.totalorder %s1304_s21, 7   ;;  %s1732_s12 = smov %s1216_s13 }
 0x14e   : > { %s1734_s15 = smov %s1228_s16  ;;  %s1735_s16 = smov %s1232_s17 }
 0x14f   : > { %s1736_s17 = smov %s1431_s20  ;;  %s1737_s18 = smov %s1304_s21 }
 0x150   :  { %17 = sbr.rel (!%p15_p4) target bundleno = 10 (0xa), region = 104 }
 0x152   : > { %s1733_s13 = smov %s1730_s26 }
 0x157   :  { %866 = vsyncpa [#allocation3], 1 }
 0x158   :  { %868 = vsyncpa [#allocation3 + $0x1], 1 }
 0x159   :  { %869 = vsyncpa [#allocation6], 1 }
 0x15a   :  { %870 = vsyncpa [#allocation4], 1 }
 0x15b   :  { %872 = vsyncpa [#allocation4 + $0x1], 1 }

</bundles_post_ra>
